<compile_context>
chip_gen: v7x
topology: tpu7x:2x2x1
jax: 0.10.0
libtpu: 0.0.40
codegen_flags: <defaults>
</compile_context>

<pallas_src>
import jax
import jax.numpy as jnp
from jax.experimental import pallas as pl
from jax.experimental.pallas import tpu as pltpu

# ---- module __init__ defaults (no learnable parameters in this module) ----
DEFORMABLE_ALIGNMENT_WEIGHT = 3.0
BOUNDARY_ENHANCEMENT_WEIGHT = 2.5
COMPLEMENTARY_FUSION_WEIGHT = 3.5
FUSION_QUALITY_WEIGHT = 4.0
ALIGNMENT_CONFIDENCE_WEIGHT = 2.0
MODAL_CONSISTENCY_WEIGHT = 1.5
FEATURE_COHERENCE_WEIGHT = 1.0
ALIGNMENT_THRESHOLD = 0.6

LOSS_NAMES = (
    "deformable_alignment_loss",
    "boundary_enhancement_loss",
    "complementary_fusion_loss",
    "fusion_quality_loss",
    "alignment_confidence_loss",
    "modal_consistency_loss",
    "feature_coherence_loss",
)

LOSS_WEIGHTS = (
    DEFORMABLE_ALIGNMENT_WEIGHT,
    BOUNDARY_ENHANCEMENT_WEIGHT,
    COMPLEMENTARY_FUSION_WEIGHT,
    FUSION_QUALITY_WEIGHT,
    ALIGNMENT_CONFIDENCE_WEIGHT,
    MODAL_CONSISTENCY_WEIGHT,
    FEATURE_COHERENCE_WEIGHT,
)

# accumulator layout in the SMEM scratch
# 0 deform   1 entropy  2 sum(bm)  3 (rw+tw-1)^2  4 sum(rw)  5 sum(tw)
# 6 std(rw)  7 std(tw)  8 aq*bm    9 wqc          10 (cf-.6)^2 11 (cf-aq)^2
# 12 |dh|    13 |dw|    14 coherence             15 rw*1{aq>.7}
_N_ACC = 16


def _make_scale_kernel(B, H, W):
    """Builds the per-scale kernel for static (B, H, W)."""
    n_elems = float(B * H * W)
    n_hw = float(H * W)
    n_dh = float(B * max(H - 1, 1) * W)
    n_dw = float(B * H * max(W - 1, 1))

    def kernel(carry_ref, aq_ref, bm_ref, rw_ref, tw_ref, cf_ref, out_ref, acc_ref):
        b = pl.program_id(0)

        # ---- init accumulators on the first grid step --------------------
        @pl.when(b == 0)
        def _init():
            for i in range(_N_ACC):
                acc_ref[i] = jnp.float32(0.0)

        # ---- single element-wise pass over one (H, W) sample -------------
        # cast in VMEM (handles bf16 inputs without an HBM round trip)
        aq = aq_ref[...].astype(jnp.float32)
        bm = bm_ref[...].astype(jnp.float32)
        rw = rw_ref[...].astype(jnp.float32)
        tw = tw_ref[...].astype(jnp.float32)
        cf = cf_ref[...].astype(jnp.float32)

        aq_m08_sq = (aq - 0.8) ** 2                       # shared by 1) and 4)
        s_deform = jnp.sum(aq_m08_sq)

        # entropy: the two logs are the only EUP work here (free slot)
        ent = bm * jnp.log(bm + 1e-8) + (1.0 - bm) * jnp.log(1.0 - bm + 1e-8)
        s_ent = jnp.sum(ent)
        s_bm = jnp.sum(bm)

        wsum_m1_sq = (rw + tw - 1.0) ** 2                 # shared by 3) and 6)
        s_norm = jnp.sum(wsum_m1_sq)
        s_rw = jnp.sum(rw)
        s_tw = jnp.sum(tw)

        # per-sample unbiased std (two-pass; full sample is in this tile)
        def sample_std(x, sx):
            mu = sx / n_hw
            d = x - mu
            var = jnp.sum(d * d, keepdims=True) / (n_hw - 1.0)   # (1,1), stays vectorized
            return jnp.sqrt(jnp.maximum(var, 0.0))[0, 0]

        s_std_rw = sample_std(rw, s_rw)
        s_std_tw = sample_std(tw, s_tw)

        s_aqbm = jnp.sum(aq * bm)
        # mean((rw*aq - 0.8*rw)^2) + mean((tw*aq - 0.8*tw)^2)
        #   == mean((rw^2 + tw^2) * (aq - 0.8)^2)
        s_wqc = jnp.sum((rw * rw + tw * tw) * aq_m08_sq)

        s_conf_t = jnp.sum((cf - ALIGNMENT_THRESHOLD) ** 2)
        s_conf_q = jnp.sum((cf - aq) ** 2)

        # neighbor-difference smoothness (sub-tile slices; tiny maps)
        def smooth_sums(x):
            dh = jnp.abs(x[1:, :] - x[:-1, :])
            dw = jnp.abs(x[:, 1:] - x[:, :-1])
            return jnp.sum(dh), jnp.sum(dw)

        dh_rw, dw_rw = smooth_sums(rw)
        dh_tw, dw_tw = smooth_sums(tw)
        s_dh = dh_rw + dh_tw
        s_dw = dw_rw + dw_tw

        # mean((aq*bm - 0.75*bm)^2) == mean(bm^2 * (aq - 0.75)^2)
        s_coh = jnp.sum(bm * bm * (aq - 0.75) ** 2)
        s_rwhq = jnp.sum(rw * (aq > 0.7).astype(jnp.float32))

        partials = (s_deform, s_ent, s_bm, s_norm, s_rw, s_tw, s_std_rw,
                    s_std_tw, s_aqbm, s_wqc, s_conf_t, s_conf_q, s_dh, s_dw,
                    s_coh, s_rwhq)
        for i, v in enumerate(partials):
            acc_ref[i] = acc_ref[i] + v

        # ---- finalize the 7 per-scale losses on the last grid step -------
        @pl.when(b == B - 1)
        def _finalize():
            inv_n = 1.0 / n_elems
            s = [acc_ref[i] for i in range(_N_ACC)]

            deform = s[0] * inv_n
            boundary = -s[1] * inv_n + (s[2] * inv_n - 0.4) ** 2

            norm_loss = s[3] * inv_n
            rgb_avg = s[4] * inv_n
            tir_avg = s[5] * inv_n
            balance = (jnp.maximum(jnp.abs(rgb_avg - 0.5) - 0.2, 0.0)
                       + jnp.maximum(jnp.abs(tir_avg - 0.5) - 0.2, 0.0))
            diversity = -(s[6] + s[7]) / float(B)
            fusion = norm_loss + balance + 0.5 * diversity

            fq = (s[8] * inv_n - 0.7) ** 2 + s[9] * inv_n
            conf = (s[10] + s[11]) * inv_n

            smooth = s[12] / n_dh + s[13] / n_dw
            modal = norm_loss + 0.2 * smooth + 0.3 * jnp.abs(rgb_avg - tir_avg)

            coh = s[14] * inv_n + (s[15] * inv_n - 0.5) ** 2

            # cross-scale accumulation in-kernel (no host-side per-scale adds)
            out_ref[0] = carry_ref[0] + deform
            out_ref[1] = carry_ref[1] + boundary
            out_ref[2] = carry_ref[2] + fusion
            out_ref[3] = carry_ref[3] + fq
            out_ref[4] = carry_ref[4] + conf
            out_ref[5] = carry_ref[5] + modal
            out_ref[6] = carry_ref[6] + coh
            out_ref[7] = carry_ref[7]          # padding lane

    return kernel


def _abam_scale_losses(carry, aq, bm, rw, tw, cf):
    """carry: (8,) f32 running per-loss sums; maps: (B, 1, H, W) any float dtype."""
    B, C, H, W = aq.shape
    assert C == 1, "ABAM alignment maps are expected to have a single channel"

    kernel = _make_scale_kernel(B, H, W)
    # NCHW read directly: batch & channel dims squeezed by the BlockSpec,
    # cast to f32 happens inside the kernel after the (H, W) tile is in VMEM.
    map_spec = pl.BlockSpec(
        (pl.Squeezed(), pl.Squeezed(), H, W), lambda b: (b, 0, 0, 0))
    smem_spec = pl.BlockSpec(memory_space=pltpu.MemorySpace.SMEM)

    return pl.pallas_call(
        kernel,
        out_shape=jax.ShapeDtypeStruct((8,), jnp.float32),
        grid=(B,),
        in_specs=[smem_spec, map_spec, map_spec, map_spec, map_spec, map_spec],
        out_specs=smem_spec,
        scratch_shapes=[pltpu.SMEM((_N_ACC,), jnp.float32)],
        compiler_params=pltpu.CompilerParams(
            dimension_semantics=("arbitrary",)),   # reduction over the batch axis
    )(carry, aq, bm, rw, tw, cf)


def abam_alignment_loss_forward(align_infos):
    """JAX/Pallas equivalent of ABAMAlignmentLoss.forward(align_infos, targets=None)."""
    num_scales = len(align_infos)
    sums = jnp.zeros((8,), dtype=jnp.float32)
    for info in align_infos:
        sums = _abam_scale_losses(
            sums,
            info["alignment_quality"],
            info["boundary_map"],
            info["rgb_weight"],
            info["tir_weight"],
            info["confidence"],
        )

    losses = sums[:7] / float(max(num_scales, 1))
    weights = jnp.asarray(LOSS_WEIGHTS, dtype=jnp.float32)
    total_loss = jnp.sum(weights * losses)
    total_loss = jnp.where(
        jnp.isnan(total_loss) | jnp.isinf(total_loss), jnp.float32(0.0), total_loss
    )
    return total_loss, losses


# ----------------------- pure-JAX reference (for checking) -----------------------
def _scale_losses_ref(aq, bm, rw, tw, cf):
    B, H, W = aq.shape
    deform = jnp.mean((aq - 0.8) ** 2)
    clarity = -jnp.mean(bm * jnp.log(bm + 1e-8) + (1 - bm) * jnp.log(1 - bm + 1e-8))
    boundary = clarity + (jnp.mean(bm) - 0.4) ** 2
    norm = jnp.mean((rw + tw - 1.0) ** 2)
    rgb_avg, tir_avg = jnp.mean(rw), jnp.mean(tw)
    balance = (
        jnp.maximum(jnp.abs(rgb_avg - 0.5) - 0.2, 0.0)
        + jnp.maximum(jnp.abs(tir_avg - 0.5) - 0.2, 0.0)
    )
    div = -(
        jnp.mean(jnp.std(rw.reshape(B, -1), axis=1, ddof=1))
        + jnp.mean(jnp.std(tw.reshape(B, -1), axis=1, ddof=1))
    )
    fusion = norm + balance + 0.5 * div
    fq = (jnp.mean(aq * bm) - 0.7) ** 2 + jnp.mean((rw * aq - rw * 0.8) ** 2) + jnp.mean(
        (tw * aq - tw * 0.8) ** 2
    )
    conf = jnp.mean((cf - ALIGNMENT_THRESHOLD) ** 2) + jnp.mean((cf - aq) ** 2)

    def smooth(x):
        return jnp.mean(jnp.abs(x[:, 1:, :] - x[:, :-1, :])) + jnp.mean(
            jnp.abs(x[:, :, 1:] - x[:, :, :-1])
        )

    modal = norm + 0.2 * (smooth(rw) + smooth(tw)) + 0.3 * jnp.abs(rgb_avg - tir_avg)
    coh = jnp.mean((aq * bm - 0.75 * bm) ** 2) + (
        jnp.mean(rw * (aq > 0.7).astype(jnp.float32)) - 0.5
    ) ** 2
    return jnp.stack([deform, boundary, fusion, fq, conf, modal, coh])


def _forward_ref(align_infos):
    sums = jnp.zeros((7,), jnp.float32)
    for info in align_infos:
        sums = sums + _scale_losses_ref(
            info["alignment_quality"][:, 0].astype(jnp.float32),
            info["boundary_map"][:, 0].astype(jnp.float32),
            info["rgb_weight"][:, 0].astype(jnp.float32),
            info["tir_weight"][:, 0].astype(jnp.float32),
            info["confidence"][:, 0].astype(jnp.float32),
        )
    losses = sums / float(len(align_infos))
    total = jnp.sum(jnp.asarray(LOSS_WEIGHTS, jnp.float32) * losses)
    return total, losses


def _safe_item(x):
    v = float(x)
    if v != v or v in (float("inf"), float("-inf")):
        return 0.0
    return v


if __name__ == "__main__":
    key = jax.random.PRNGKey(0)
    align_infos = []
    for hw in (16, 8):  # two scales
        key, *ks = jax.random.split(key, 6)
        align_infos.append(
            {
                "alignment_quality": jax.random.uniform(ks[0], (2, 1, hw, hw), jnp.float32),
                "boundary_map": jax.random.uniform(ks[1], (2, 1, hw, hw), jnp.float32),
                "rgb_weight": jax.random.uniform(ks[2], (2, 1, hw, hw), jnp.float32),
                "tir_weight": jax.random.uniform(ks[3], (2, 1, hw, hw), jnp.float32),
                "confidence": jax.random.uniform(ks[4], (2, 1, hw, hw), jnp.float32),
            }
        )

    total_loss, losses = abam_alignment_loss_forward(align_infos)
    total_loss = jax.block_until_ready(total_loss)
    losses = jax.block_until_ready(losses)

    loss_dict = {"total_loss": _safe_item(total_loss)}
    for i, name in enumerate(LOSS_NAMES):
        loss_dict[name] = _safe_item(losses[i])

    # sanity-check against a pure-JAX reference of the same math
    ref_total, ref_losses = _forward_ref(align_infos)
    assert abs(float(total_loss) - float(ref_total)) < 2e-3, (
        float(total_loss),
        float(ref_total),
    )
    assert jnp.allclose(losses, ref_losses, atol=2e-3, rtol=2e-3)

    print("KERNEL_OK")
</pallas_src>

<mosaic_0001>
module attributes {stable_mosaic.version = 11 : i64} {
  func.func @kernel(%arg0: i32, %arg1: memref<8xf32, #tpu.memory_space<smem>>, %arg2: memref<1x1x16x16xf32, #tpu.memory_space<vmem>>, %arg3: memref<1x1x16x16xf32, #tpu.memory_space<vmem>>, %arg4: memref<1x1x16x16xf32, #tpu.memory_space<vmem>>, %arg5: memref<1x1x16x16xf32, #tpu.memory_space<vmem>>, %arg6: memref<1x1x16x16xf32, #tpu.memory_space<vmem>>, %arg7: memref<8xf32, #tpu.memory_space<smem>>, %arg8: memref<16xf32, #tpu.memory_space<smem>>) attributes {dimension_semantics = [#tpu.dimension_semantics<arbitrary>], iteration_bounds = array<i64: 2>, scalar_prefetch = 0 : i64, scratch_operands = 1 : i64, tpu.core_type = #tpu.core_type<tc>, window_params = [{transform_indices = @transform_0, window_bounds = array<i64: 8>}, {transform_indices = @transform_1, window_bounds = array<i64: 1, 1, 16, 16>}, {transform_indices = @transform_2, window_bounds = array<i64: 1, 1, 16, 16>}, {transform_indices = @transform_3, window_bounds = array<i64: 1, 1, 16, 16>}, {transform_indices = @transform_4, window_bounds = array<i64: 1, 1, 16, 16>}, {transform_indices = @transform_5, window_bounds = array<i64: 1, 1, 16, 16>}, {transform_indices = @transform_6, window_bounds = array<i64: 8>}]} {
    %c0_i32 = arith.constant 0 : i32
    %0 = arith.cmpi eq, %arg0, %c0_i32 : i32
    %1 = arith.extui %0 : i1 to i32
    %c0_i32_0 = arith.constant 0 : i32
    %2 = arith.cmpi ne, %1, %c0_i32_0 : i32
    scf.if %2 {
      %cst_70 = arith.constant 0.000000e+00 : f32
      %c0_71 = arith.constant 0 : index
      %216 = memref.load %arg8[%c0_71] : memref<16xf32, #tpu.memory_space<smem>>
      memref.store %cst_70, %arg8[%c0_71] : memref<16xf32, #tpu.memory_space<smem>>
      %cst_72 = arith.constant 0.000000e+00 : f32
      %c1_73 = arith.constant 1 : index
      %217 = memref.load %arg8[%c1_73] : memref<16xf32, #tpu.memory_space<smem>>
      memref.store %cst_72, %arg8[%c1_73] : memref<16xf32, #tpu.memory_space<smem>>
      %cst_74 = arith.constant 0.000000e+00 : f32
      %c2_75 = arith.constant 2 : index
      %218 = memref.load %arg8[%c2_75] : memref<16xf32, #tpu.memory_space<smem>>
      memref.store %cst_74, %arg8[%c2_75] : memref<16xf32, #tpu.memory_space<smem>>
      %cst_76 = arith.constant 0.000000e+00 : f32
      %c3_77 = arith.constant 3 : index
      %219 = memref.load %arg8[%c3_77] : memref<16xf32, #tpu.memory_space<smem>>
      memref.store %cst_76, %arg8[%c3_77] : memref<16xf32, #tpu.memory_space<smem>>
      %cst_78 = arith.constant 0.000000e+00 : f32
      %c4_79 = arith.constant 4 : index
      %220 = memref.load %arg8[%c4_79] : memref<16xf32, #tpu.memory_space<smem>>
      memref.store %cst_78, %arg8[%c4_79] : memref<16xf32, #tpu.memory_space<smem>>
      %cst_80 = arith.constant 0.000000e+00 : f32
      %c5_81 = arith.constant 5 : index
      %221 = memref.load %arg8[%c5_81] : memref<16xf32, #tpu.memory_space<smem>>
      memref.store %cst_80, %arg8[%c5_81] : memref<16xf32, #tpu.memory_space<smem>>
      %cst_82 = arith.constant 0.000000e+00 : f32
      %c6_83 = arith.constant 6 : index
      %222 = memref.load %arg8[%c6_83] : memref<16xf32, #tpu.memory_space<smem>>
      memref.store %cst_82, %arg8[%c6_83] : memref<16xf32, #tpu.memory_space<smem>>
      %cst_84 = arith.constant 0.000000e+00 : f32
      %c7_85 = arith.constant 7 : index
      %223 = memref.load %arg8[%c7_85] : memref<16xf32, #tpu.memory_space<smem>>
      memref.store %cst_84, %arg8[%c7_85] : memref<16xf32, #tpu.memory_space<smem>>
      %cst_86 = arith.constant 0.000000e+00 : f32
      %c8_87 = arith.constant 8 : index
      %224 = memref.load %arg8[%c8_87] : memref<16xf32, #tpu.memory_space<smem>>
      memref.store %cst_86, %arg8[%c8_87] : memref<16xf32, #tpu.memory_space<smem>>
      %cst_88 = arith.constant 0.000000e+00 : f32
      %c9_89 = arith.constant 9 : index
      %225 = memref.load %arg8[%c9_89] : memref<16xf32, #tpu.memory_space<smem>>
      memref.store %cst_88, %arg8[%c9_89] : memref<16xf32, #tpu.memory_space<smem>>
      %cst_90 = arith.constant 0.000000e+00 : f32
      %c10_91 = arith.constant 10 : index
      %226 = memref.load %arg8[%c10_91] : memref<16xf32, #tpu.memory_space<smem>>
      memref.store %cst_90, %arg8[%c10_91] : memref<16xf32, #tpu.memory_space<smem>>
      %cst_92 = arith.constant 0.000000e+00 : f32
      %c11_93 = arith.constant 11 : index
      %227 = memref.load %arg8[%c11_93] : memref<16xf32, #tpu.memory_space<smem>>
      memref.store %cst_92, %arg8[%c11_93] : memref<16xf32, #tpu.memory_space<smem>>
      %cst_94 = arith.constant 0.000000e+00 : f32
      %c12_95 = arith.constant 12 : index
      %228 = memref.load %arg8[%c12_95] : memref<16xf32, #tpu.memory_space<smem>>
      memref.store %cst_94, %arg8[%c12_95] : memref<16xf32, #tpu.memory_space<smem>>
      %cst_96 = arith.constant 0.000000e+00 : f32
      %c13_97 = arith.constant 13 : index
      %229 = memref.load %arg8[%c13_97] : memref<16xf32, #tpu.memory_space<smem>>
      memref.store %cst_96, %arg8[%c13_97] : memref<16xf32, #tpu.memory_space<smem>>
      %cst_98 = arith.constant 0.000000e+00 : f32
      %c14_99 = arith.constant 14 : index
      %230 = memref.load %arg8[%c14_99] : memref<16xf32, #tpu.memory_space<smem>>
      memref.store %cst_98, %arg8[%c14_99] : memref<16xf32, #tpu.memory_space<smem>>
      %cst_100 = arith.constant 0.000000e+00 : f32
      %c15_101 = arith.constant 15 : index
      %231 = memref.load %arg8[%c15_101] : memref<16xf32, #tpu.memory_space<smem>>
      memref.store %cst_100, %arg8[%c15_101] : memref<16xf32, #tpu.memory_space<smem>>
    } else {
    }
    %c0 = arith.constant 0 : index
    %c0_1 = arith.constant 0 : index
    %c0_2 = arith.constant 0 : index
    %c0_3 = arith.constant 0 : index
    %3 = vector.load %arg2[%c0, %c0_1, %c0_2, %c0_3] : memref<1x1x16x16xf32, #tpu.memory_space<vmem>>, vector<1x1x16x16xf32>
    %4 = vector.shape_cast %3 : vector<1x1x16x16xf32> to vector<16x16xf32>
    %c0_4 = arith.constant 0 : index
    %c0_5 = arith.constant 0 : index
    %c0_6 = arith.constant 0 : index
    %c0_7 = arith.constant 0 : index
    %5 = vector.load %arg3[%c0_4, %c0_5, %c0_6, %c0_7] : memref<1x1x16x16xf32, #tpu.memory_space<vmem>>, vector<1x1x16x16xf32>
    %6 = vector.shape_cast %5 : vector<1x1x16x16xf32> to vector<16x16xf32>
    %c0_8 = arith.constant 0 : index
    %c0_9 = arith.constant 0 : index
    %c0_10 = arith.constant 0 : index
    %c0_11 = arith.constant 0 : index
    %7 = vector.load %arg4[%c0_8, %c0_9, %c0_10, %c0_11] : memref<1x1x16x16xf32, #tpu.memory_space<vmem>>, vector<1x1x16x16xf32>
    %8 = vector.shape_cast %7 : vector<1x1x16x16xf32> to vector<16x16xf32>
    %c0_12 = arith.constant 0 : index
    %c0_13 = arith.constant 0 : index
    %c0_14 = arith.constant 0 : index
    %c0_15 = arith.constant 0 : index
    %9 = vector.load %arg5[%c0_12, %c0_13, %c0_14, %c0_15] : memref<1x1x16x16xf32, #tpu.memory_space<vmem>>, vector<1x1x16x16xf32>
    %10 = vector.shape_cast %9 : vector<1x1x16x16xf32> to vector<16x16xf32>
    %c0_16 = arith.constant 0 : index
    %c0_17 = arith.constant 0 : index
    %c0_18 = arith.constant 0 : index
    %c0_19 = arith.constant 0 : index
    %11 = vector.load %arg6[%c0_16, %c0_17, %c0_18, %c0_19] : memref<1x1x16x16xf32, #tpu.memory_space<vmem>>, vector<1x1x16x16xf32>
    %12 = vector.shape_cast %11 : vector<1x1x16x16xf32> to vector<16x16xf32>
    %cst = arith.constant 8.000000e-01 : f32
    %13 = vector.broadcast %cst : f32 to vector<16x16xf32>
    %14 = arith.subf %4, %13 : vector<16x16xf32>
    %15 = arith.mulf %14, %14 : vector<16x16xf32>
    %16 = vector.shape_cast %15 : vector<16x16xf32> to vector<1x16x16xf32>
    %cst_20 = arith.constant dense<0.000000e+00> : vector<1xf32>
    %17 = vector.multi_reduction <add>, %16, %cst_20 [1, 2] : vector<1x16x16xf32> to vector<1xf32>
    %18 = vector.shape_cast %17 : vector<1xf32> to vector<1x1x1xf32>
    %19 = vector.extract %18[0, 0, 0] : f32 from vector<1x1x1xf32>
    %cst_21 = arith.constant 9.99999993E-9 : f32
    %20 = vector.broadcast %cst_21 : f32 to vector<16x16xf32>
    %21 = arith.addf %6, %20 : vector<16x16xf32>
    %22 = math.log %21 : vector<16x16xf32>
    %23 = arith.mulf %6, %22 : vector<16x16xf32>
    %cst_22 = arith.constant 1.000000e+00 : f32
    %24 = vector.broadcast %cst_22 : f32 to vector<16x16xf32>
    %25 = arith.subf %24, %6 : vector<16x16xf32>
    %cst_23 = arith.constant 1.000000e+00 : f32
    %26 = vector.broadcast %cst_23 : f32 to vector<16x16xf32>
    %27 = arith.subf %26, %6 : vector<16x16xf32>
    %cst_24 = arith.constant 9.99999993E-9 : f32
    %28 = vector.broadcast %cst_24 : f32 to vector<16x16xf32>
    %29 = arith.addf %27, %28 : vector<16x16xf32>
    %30 = math.log %29 : vector<16x16xf32>
    %31 = arith.mulf %25, %30 : vector<16x16xf32>
    %32 = arith.addf %23, %31 : vector<16x16xf32>
    %33 = vector.shape_cast %32 : vector<16x16xf32> to vector<1x16x16xf32>
    %cst_25 = arith.constant dense<0.000000e+00> : vector<1xf32>
    %34 = vector.multi_reduction <add>, %33, %cst_25 [1, 2] : vector<1x16x16xf32> to vector<1xf32>
    %35 = vector.shape_cast %34 : vector<1xf32> to vector<1x1x1xf32>
    %36 = vector.extract %35[0, 0, 0] : f32 from vector<1x1x1xf32>
    %37 = vector.shape_cast %6 : vector<16x16xf32> to vector<1x16x16xf32>
    %cst_26 = arith.constant dense<0.000000e+00> : vector<1xf32>
    %38 = vector.multi_reduction <add>, %37, %cst_26 [1, 2] : vector<1x16x16xf32> to vector<1xf32>
    %39 = vector.shape_cast %38 : vector<1xf32> to vector<1x1x1xf32>
    %40 = vector.extract %39[0, 0, 0] : f32 from vector<1x1x1xf32>
    %41 = arith.addf %8, %10 : vector<16x16xf32>
    %cst_27 = arith.constant 1.000000e+00 : f32
    %42 = vector.broadcast %cst_27 : f32 to vector<16x16xf32>
    %43 = arith.subf %41, %42 : vector<16x16xf32>
    %44 = arith.mulf %43, %43 : vector<16x16xf32>
    %45 = vector.shape_cast %44 : vector<16x16xf32> to vector<1x16x16xf32>
    %cst_28 = arith.constant dense<0.000000e+00> : vector<1xf32>
    %46 = vector.multi_reduction <add>, %45, %cst_28 [1, 2] : vector<1x16x16xf32> to vector<1xf32>
    %47 = vector.shape_cast %46 : vector<1xf32> to vector<1x1x1xf32>
    %48 = vector.extract %47[0, 0, 0] : f32 from vector<1x1x1xf32>
    %49 = vector.shape_cast %8 : vector<16x16xf32> to vector<1x16x16xf32>
    %cst_29 = arith.constant dense<0.000000e+00> : vector<1xf32>
    %50 = vector.multi_reduction <add>, %49, %cst_29 [1, 2] : vector<1x16x16xf32> to vector<1xf32>
    %51 = vector.shape_cast %50 : vector<1xf32> to vector<1x1x1xf32>
    %52 = vector.extract %51[0, 0, 0] : f32 from vector<1x1x1xf32>
    %53 = vector.shape_cast %10 : vector<16x16xf32> to vector<1x16x16xf32>
    %cst_30 = arith.constant dense<0.000000e+00> : vector<1xf32>
    %54 = vector.multi_reduction <add>, %53, %cst_30 [1, 2] : vector<1x16x16xf32> to vector<1xf32>
    %55 = vector.shape_cast %54 : vector<1xf32> to vector<1x1x1xf32>
    %56 = vector.extract %55[0, 0, 0] : f32 from vector<1x1x1xf32>
    %cst_31 = arith.constant 2.560000e+02 : f32
    %57 = arith.divf %52, %cst_31 : f32
    %58 = vector.broadcast %57 : f32 to vector<16x16xf32>
    %59 = arith.subf %8, %58 : vector<16x16xf32>
    %60 = arith.mulf %59, %59 : vector<16x16xf32>
    %61 = vector.shape_cast %60 : vector<16x16xf32> to vector<1x16x16xf32>
    %cst_32 = arith.constant dense<0.000000e+00> : vector<1xf32>
    %62 = vector.multi_reduction <add>, %61, %cst_32 [1, 2] : vector<1x16x16xf32> to vector<1xf32>
    %63 = vector.shape_cast %62 : vector<1xf32> to vector<1x1x1xf32>
    %64 = vector.extract %63[0, 0, 0] : f32 from vector<1x1x1xf32>
    %65 = vector.broadcast %64 : f32 to vector<1x1xf32>
    %cst_33 = arith.constant 2.550000e+02 : f32
    %66 = vector.broadcast %cst_33 : f32 to vector<1x1xf32>
    %67 = arith.divf %65, %66 : vector<1x1xf32>
    %cst_34 = arith.constant 0.000000e+00 : f32
    %68 = vector.broadcast %cst_34 : f32 to vector<1x1xf32>
    %69 = arith.maximumf %67, %68 : vector<1x1xf32>
    %70 = math.sqrt %69 : vector<1x1xf32>
    %71 = vector.extract %70[0, 0] : f32 from vector<1x1xf32>
    %cst_35 = arith.constant 2.560000e+02 : f32
    %72 = arith.divf %56, %cst_35 : f32
    %73 = vector.broadcast %72 : f32 to vector<16x16xf32>
    %74 = arith.subf %10, %73 : vector<16x16xf32>
    %75 = arith.mulf %74, %74 : vector<16x16xf32>
    %76 = vector.shape_cast %75 : vector<16x16xf32> to vector<1x16x16xf32>
    %cst_36 = arith.constant dense<0.000000e+00> : vector<1xf32>
    %77 = vector.multi_reduction <add>, %76, %cst_36 [1, 2] : vector<1x16x16xf32> to vector<1xf32>
    %78 = vector.shape_cast %77 : vector<1xf32> to vector<1x1x1xf32>
    %79 = vector.extract %78[0, 0, 0] : f32 from vector<1x1x1xf32>
    %80 = vector.broadcast %79 : f32 to vector<1x1xf32>
    %cst_37 = arith.constant 2.550000e+02 : f32
    %81 = vector.broadcast %cst_37 : f32 to vector<1x1xf32>
    %82 = arith.divf %80, %81 : vector<1x1xf32>
    %cst_38 = arith.constant 0.000000e+00 : f32
    %83 = vector.broadcast %cst_38 : f32 to vector<1x1xf32>
    %84 = arith.maximumf %82, %83 : vector<1x1xf32>
    %85 = math.sqrt %84 : vector<1x1xf32>
    %86 = vector.extract %85[0, 0] : f32 from vector<1x1xf32>
    %87 = arith.mulf %4, %6 : vector<16x16xf32>
    %88 = vector.shape_cast %87 : vector<16x16xf32> to vector<1x16x16xf32>
    %cst_39 = arith.constant dense<0.000000e+00> : vector<1xf32>
    %89 = vector.multi_reduction <add>, %88, %cst_39 [1, 2] : vector<1x16x16xf32> to vector<1xf32>
    %90 = vector.shape_cast %89 : vector<1xf32> to vector<1x1x1xf32>
    %91 = vector.extract %90[0, 0, 0] : f32 from vector<1x1x1xf32>
    %92 = arith.mulf %8, %8 : vector<16x16xf32>
    %93 = arith.mulf %10, %10 : vector<16x16xf32>
    %94 = arith.addf %92, %93 : vector<16x16xf32>
    %95 = arith.mulf %94, %15 : vector<16x16xf32>
    %96 = vector.shape_cast %95 : vector<16x16xf32> to vector<1x16x16xf32>
    %cst_40 = arith.constant dense<0.000000e+00> : vector<1xf32>
    %97 = vector.multi_reduction <add>, %96, %cst_40 [1, 2] : vector<1x16x16xf32> to vector<1xf32>
    %98 = vector.shape_cast %97 : vector<1xf32> to vector<1x1x1xf32>
    %99 = vector.extract %98[0, 0, 0] : f32 from vector<1x1x1xf32>
    %cst_41 = arith.constant 6.000000e-01 : f32
    %100 = vector.broadcast %cst_41 : f32 to vector<16x16xf32>
    %101 = arith.subf %12, %100 : vector<16x16xf32>
    %102 = arith.mulf %101, %101 : vector<16x16xf32>
    %103 = vector.shape_cast %102 : vector<16x16xf32> to vector<1x16x16xf32>
    %cst_42 = arith.constant dense<0.000000e+00> : vector<1xf32>
    %104 = vector.multi_reduction <add>, %103, %cst_42 [1, 2] : vector<1x16x16xf32> to vector<1xf32>
    %105 = vector.shape_cast %104 : vector<1xf32> to vector<1x1x1xf32>
    %106 = vector.extract %105[0, 0, 0] : f32 from vector<1x1x1xf32>
    %107 = arith.subf %12, %4 : vector<16x16xf32>
    %108 = arith.mulf %107, %107 : vector<16x16xf32>
    %109 = vector.shape_cast %108 : vector<16x16xf32> to vector<1x16x16xf32>
    %cst_43 = arith.constant dense<0.000000e+00> : vector<1xf32>
    %110 = vector.multi_reduction <add>, %109, %cst_43 [1, 2] : vector<1x16x16xf32> to vector<1xf32>
    %111 = vector.shape_cast %110 : vector<1xf32> to vector<1x1x1xf32>
    %112 = vector.extract %111[0, 0, 0] : f32 from vector<1x1x1xf32>
    %113 = vector.extract_strided_slice %8 {offsets = [1, 0], sizes = [15, 16], strides = [1, 1]} : vector<16x16xf32> to vector<15x16xf32>
    %114 = vector.extract_strided_slice %8 {offsets = [0, 0], sizes = [15, 16], strides = [1, 1]} : vector<16x16xf32> to vector<15x16xf32>
    %115 = arith.subf %113, %114 : vector<15x16xf32>
    %116 = math.absf %115 : vector<15x16xf32>
    %117 = vector.extract_strided_slice %8 {offsets = [0, 1], sizes = [16, 15], strides = [1, 1]} : vector<16x16xf32> to vector<16x15xf32>
    %118 = vector.extract_strided_slice %8 {offsets = [0, 0], sizes = [16, 15], strides = [1, 1]} : vector<16x16xf32> to vector<16x15xf32>
    %119 = arith.subf %117, %118 : vector<16x15xf32>
    %120 = math.absf %119 : vector<16x15xf32>
    %121 = vector.shape_cast %116 : vector<15x16xf32> to vector<1x15x16xf32>
    %cst_44 = arith.constant dense<0.000000e+00> : vector<1xf32>
    %122 = vector.multi_reduction <add>, %121, %cst_44 [1, 2] : vector<1x15x16xf32> to vector<1xf32>
    %123 = vector.shape_cast %122 : vector<1xf32> to vector<1x1x1xf32>
    %124 = vector.extract %123[0, 0, 0] : f32 from vector<1x1x1xf32>
    %125 = vector.shape_cast %120 : vector<16x15xf32> to vector<1x16x15xf32>
    %cst_45 = arith.constant dense<0.000000e+00> : vector<1xf32>
    %126 = vector.multi_reduction <add>, %125, %cst_45 [1, 2] : vector<1x16x15xf32> to vector<1xf32>
    %127 = vector.shape_cast %126 : vector<1xf32> to vector<1x1x1xf32>
    %128 = vector.extract %127[0, 0, 0] : f32 from vector<1x1x1xf32>
    %129 = vector.extract_strided_slice %10 {offsets = [1, 0], sizes = [15, 16], strides = [1, 1]} : vector<16x16xf32> to vector<15x16xf32>
    %130 = vector.extract_strided_slice %10 {offsets = [0, 0], sizes = [15, 16], strides = [1, 1]} : vector<16x16xf32> to vector<15x16xf32>
    %131 = arith.subf %129, %130 : vector<15x16xf32>
    %132 = math.absf %131 : vector<15x16xf32>
    %133 = vector.extract_strided_slice %10 {offsets = [0, 1], sizes = [16, 15], strides = [1, 1]} : vector<16x16xf32> to vector<16x15xf32>
    %134 = vector.extract_strided_slice %10 {offsets = [0, 0], sizes = [16, 15], strides = [1, 1]} : vector<16x16xf32> to vector<16x15xf32>
    %135 = arith.subf %133, %134 : vector<16x15xf32>
    %136 = math.absf %135 : vector<16x15xf32>
    %137 = vector.shape_cast %132 : vector<15x16xf32> to vector<1x15x16xf32>
    %cst_46 = arith.constant dense<0.000000e+00> : vector<1xf32>
    %138 = vector.multi_reduction <add>, %137, %cst_46 [1, 2] : vector<1x15x16xf32> to vector<1xf32>
    %139 = vector.shape_cast %138 : vector<1xf32> to vector<1x1x1xf32>
    %140 = vector.extract %139[0, 0, 0] : f32 from vector<1x1x1xf32>
    %141 = vector.shape_cast %136 : vector<16x15xf32> to vector<1x16x15xf32>
    %cst_47 = arith.constant dense<0.000000e+00> : vector<1xf32>
    %142 = vector.multi_reduction <add>, %141, %cst_47 [1, 2] : vector<1x16x15xf32> to vector<1xf32>
    %143 = vector.shape_cast %142 : vector<1xf32> to vector<1x1x1xf32>
    %144 = vector.extract %143[0, 0, 0] : f32 from vector<1x1x1xf32>
    %145 = arith.addf %124, %140 : f32
    %146 = arith.addf %128, %144 : f32
    %147 = arith.mulf %6, %6 : vector<16x16xf32>
    %cst_48 = arith.constant 7.500000e-01 : f32
    %148 = vector.broadcast %cst_48 : f32 to vector<16x16xf32>
    %149 = arith.subf %4, %148 : vector<16x16xf32>
    %150 = arith.mulf %149, %149 : vector<16x16xf32>
    %151 = arith.mulf %147, %150 : vector<16x16xf32>
    %152 = vector.shape_cast %151 : vector<16x16xf32> to vector<1x16x16xf32>
    %cst_49 = arith.constant dense<0.000000e+00> : vector<1xf32>
    %153 = vector.multi_reduction <add>, %152, %cst_49 [1, 2] : vector<1x16x16xf32> to vector<1xf32>
    %154 = vector.shape_cast %153 : vector<1xf32> to vector<1x1x1xf32>
    %155 = vector.extract %154[0, 0, 0] : f32 from vector<1x1x1xf32>
    %cst_50 = arith.constant 0.699999988 : f32
    %156 = vector.broadcast %cst_50 : f32 to vector<16x16xf32>
    %157 = arith.cmpf ogt, %4, %156 : vector<16x16xf32>
    %158 = arith.extui %157 : vector<16x16xi1> to vector<16x16xi32>
    %159 = arith.sitofp %158 : vector<16x16xi32> to vector<16x16xf32>
    %160 = arith.mulf %8, %159 : vector<16x16xf32>
    %161 = vector.shape_cast %160 : vector<16x16xf32> to vector<1x16x16xf32>
    %cst_51 = arith.constant dense<0.000000e+00> : vector<1xf32>
    %162 = vector.multi_reduction <add>, %161, %cst_51 [1, 2] : vector<1x16x16xf32> to vector<1xf32>
    %163 = vector.shape_cast %162 : vector<1xf32> to vector<1x1x1xf32>
    %164 = vector.extract %163[0, 0, 0] : f32 from vector<1x1x1xf32>
    %c0_52 = arith.constant 0 : index
    %165 = memref.load %arg8[%c0_52] : memref<16xf32, #tpu.memory_space<smem>>
    %166 = arith.addf %165, %19 : f32
    %c0_53 = arith.constant 0 : index
    %167 = memref.load %arg8[%c0_53] : memref<16xf32, #tpu.memory_space<smem>>
    memref.store %166, %arg8[%c0_53] : memref<16xf32, #tpu.memory_space<smem>>
    %c1 = arith.constant 1 : index
    %168 = memref.load %arg8[%c1] : memref<16xf32, #tpu.memory_space<smem>>
    %169 = arith.addf %168, %36 : f32
    %c1_54 = arith.constant 1 : index
    %170 = memref.load %arg8[%c1_54] : memref<16xf32, #tpu.memory_space<smem>>
    memref.store %169, %arg8[%c1_54] : memref<16xf32, #tpu.memory_space<smem>>
    %c2 = arith.constant 2 : index
    %171 = memref.load %arg8[%c2] : memref<16xf32, #tpu.memory_space<smem>>
    %172 = arith.addf %171, %40 : f32
    %c2_55 = arith.constant 2 : index
    %173 = memref.load %arg8[%c2_55] : memref<16xf32, #tpu.memory_space<smem>>
    memref.store %172, %arg8[%c2_55] : memref<16xf32, #tpu.memory_space<smem>>
    %c3 = arith.constant 3 : index
    %174 = memref.load %arg8[%c3] : memref<16xf32, #tpu.memory_space<smem>>
    %175 = arith.addf %174, %48 : f32
    %c3_56 = arith.constant 3 : index
    %176 = memref.load %arg8[%c3_56] : memref<16xf32, #tpu.memory_space<smem>>
    memref.store %175, %arg8[%c3_56] : memref<16xf32, #tpu.memory_space<smem>>
    %c4 = arith.constant 4 : index
    %177 = memref.load %arg8[%c4] : memref<16xf32, #tpu.memory_space<smem>>
    %178 = arith.addf %177, %52 : f32
    %c4_57 = arith.constant 4 : index
    %179 = memref.load %arg8[%c4_57] : memref<16xf32, #tpu.memory_space<smem>>
    memref.store %178, %arg8[%c4_57] : memref<16xf32, #tpu.memory_space<smem>>
    %c5 = arith.constant 5 : index
    %180 = memref.load %arg8[%c5] : memref<16xf32, #tpu.memory_space<smem>>
    %181 = arith.addf %180, %56 : f32
    %c5_58 = arith.constant 5 : index
    %182 = memref.load %arg8[%c5_58] : memref<16xf32, #tpu.memory_space<smem>>
    memref.store %181, %arg8[%c5_58] : memref<16xf32, #tpu.memory_space<smem>>
    %c6 = arith.constant 6 : index
    %183 = memref.load %arg8[%c6] : memref<16xf32, #tpu.memory_space<smem>>
    %184 = arith.addf %183, %71 : f32
    %c6_59 = arith.constant 6 : index
    %185 = memref.load %arg8[%c6_59] : memref<16xf32, #tpu.memory_space<smem>>
    memref.store %184, %arg8[%c6_59] : memref<16xf32, #tpu.memory_space<smem>>
    %c7 = arith.constant 7 : index
    %186 = memref.load %arg8[%c7] : memref<16xf32, #tpu.memory_space<smem>>
    %187 = arith.addf %186, %86 : f32
    %c7_60 = arith.constant 7 : index
    %188 = memref.load %arg8[%c7_60] : memref<16xf32, #tpu.memory_space<smem>>
    memref.store %187, %arg8[%c7_60] : memref<16xf32, #tpu.memory_space<smem>>
    %c8 = arith.constant 8 : index
    %189 = memref.load %arg8[%c8] : memref<16xf32, #tpu.memory_space<smem>>
    %190 = arith.addf %189, %91 : f32
    %c8_61 = arith.constant 8 : index
    %191 = memref.load %arg8[%c8_61] : memref<16xf32, #tpu.memory_space<smem>>
    memref.store %190, %arg8[%c8_61] : memref<16xf32, #tpu.memory_space<smem>>
    %c9 = arith.constant 9 : index
    %192 = memref.load %arg8[%c9] : memref<16xf32, #tpu.memory_space<smem>>
    %193 = arith.addf %192, %99 : f32
    %c9_62 = arith.constant 9 : index
    %194 = memref.load %arg8[%c9_62] : memref<16xf32, #tpu.memory_space<smem>>
    memref.store %193, %arg8[%c9_62] : memref<16xf32, #tpu.memory_space<smem>>
    %c10 = arith.constant 10 : index
    %195 = memref.load %arg8[%c10] : memref<16xf32, #tpu.memory_space<smem>>
    %196 = arith.addf %195, %106 : f32
    %c10_63 = arith.constant 10 : index
    %197 = memref.load %arg8[%c10_63] : memref<16xf32, #tpu.memory_space<smem>>
    memref.store %196, %arg8[%c10_63] : memref<16xf32, #tpu.memory_space<smem>>
    %c11 = arith.constant 11 : index
    %198 = memref.load %arg8[%c11] : memref<16xf32, #tpu.memory_space<smem>>
    %199 = arith.addf %198, %112 : f32
    %c11_64 = arith.constant 11 : index
    %200 = memref.load %arg8[%c11_64] : memref<16xf32, #tpu.memory_space<smem>>
    memref.store %199, %arg8[%c11_64] : memref<16xf32, #tpu.memory_space<smem>>
    %c12 = arith.constant 12 : index
    %201 = memref.load %arg8[%c12] : memref<16xf32, #tpu.memory_space<smem>>
    %202 = arith.addf %201, %145 : f32
    %c12_65 = arith.constant 12 : index
    %203 = memref.load %arg8[%c12_65] : memref<16xf32, #tpu.memory_space<smem>>
    memref.store %202, %arg8[%c12_65] : memref<16xf32, #tpu.memory_space<smem>>
    %c13 = arith.constant 13 : index
    %204 = memref.load %arg8[%c13] : memref<16xf32, #tpu.memory_space<smem>>
    %205 = arith.addf %204, %146 : f32
    %c13_66 = arith.constant 13 : index
    %206 = memref.load %arg8[%c13_66] : memref<16xf32, #tpu.memory_space<smem>>
    memref.store %205, %arg8[%c13_66] : memref<16xf32, #tpu.memory_space<smem>>
    %c14 = arith.constant 14 : index
    %207 = memref.load %arg8[%c14] : memref<16xf32, #tpu.memory_space<smem>>
    %208 = arith.addf %207, %155 : f32
    %c14_67 = arith.constant 14 : index
    %209 = memref.load %arg8[%c14_67] : memref<16xf32, #tpu.memory_space<smem>>
    memref.store %208, %arg8[%c14_67] : memref<16xf32, #tpu.memory_space<smem>>
    %c15 = arith.constant 15 : index
    %210 = memref.load %arg8[%c15] : memref<16xf32, #tpu.memory_space<smem>>
    %211 = arith.addf %210, %164 : f32
    %c15_68 = arith.constant 15 : index
    %212 = memref.load %arg8[%c15_68] : memref<16xf32, #tpu.memory_space<smem>>
    memref.store %211, %arg8[%c15_68] : memref<16xf32, #tpu.memory_space<smem>>
    %c1_i32 = arith.constant 1 : i32
    %213 = arith.cmpi eq, %arg0, %c1_i32 : i32
    %214 = arith.extui %213 : i1 to i32
    %c0_i32_69 = arith.constant 0 : i32
    %215 = arith.cmpi ne, %214, %c0_i32_69 : i32
    scf.if %215 {
      %c0_70 = arith.constant 0 : index
      %216 = memref.load %arg8[%c0_70] : memref<16xf32, #tpu.memory_space<smem>>
      %c1_71 = arith.constant 1 : index
      %217 = memref.load %arg8[%c1_71] : memref<16xf32, #tpu.memory_space<smem>>
      %c2_72 = arith.constant 2 : index
      %218 = memref.load %arg8[%c2_72] : memref<16xf32, #tpu.memory_space<smem>>
      %c3_73 = arith.constant 3 : index
      %219 = memref.load %arg8[%c3_73] : memref<16xf32, #tpu.memory_space<smem>>
      %c4_74 = arith.constant 4 : index
      %220 = memref.load %arg8[%c4_74] : memref<16xf32, #tpu.memory_space<smem>>
      %c5_75 = arith.constant 5 : index
      %221 = memref.load %arg8[%c5_75] : memref<16xf32, #tpu.memory_space<smem>>
      %c6_76 = arith.constant 6 : index
      %222 = memref.load %arg8[%c6_76] : memref<16xf32, #tpu.memory_space<smem>>
      %c7_77 = arith.constant 7 : index
      %223 = memref.load %arg8[%c7_77] : memref<16xf32, #tpu.memory_space<smem>>
      %c8_78 = arith.constant 8 : index
      %224 = memref.load %arg8[%c8_78] : memref<16xf32, #tpu.memory_space<smem>>
      %c9_79 = arith.constant 9 : index
      %225 = memref.load %arg8[%c9_79] : memref<16xf32, #tpu.memory_space<smem>>
      %c10_80 = arith.constant 10 : index
      %226 = memref.load %arg8[%c10_80] : memref<16xf32, #tpu.memory_space<smem>>
      %c11_81 = arith.constant 11 : index
      %227 = memref.load %arg8[%c11_81] : memref<16xf32, #tpu.memory_space<smem>>
      %c12_82 = arith.constant 12 : index
      %228 = memref.load %arg8[%c12_82] : memref<16xf32, #tpu.memory_space<smem>>
      %c13_83 = arith.constant 13 : index
      %229 = memref.load %arg8[%c13_83] : memref<16xf32, #tpu.memory_space<smem>>
      %c14_84 = arith.constant 14 : index
      %230 = memref.load %arg8[%c14_84] : memref<16xf32, #tpu.memory_space<smem>>
      %c15_85 = arith.constant 15 : index
      %231 = memref.load %arg8[%c15_85] : memref<16xf32, #tpu.memory_space<smem>>
      %cst_86 = arith.constant 0.001953125 : f32
      %232 = arith.mulf %216, %cst_86 : f32
      %cst_87 = arith.constant 0.000000e+00 : f32
      %233 = arith.subf %cst_87, %217 : f32
      %cst_88 = arith.constant 0.001953125 : f32
      %234 = arith.mulf %233, %cst_88 : f32
      %cst_89 = arith.constant 0.001953125 : f32
      %235 = arith.mulf %218, %cst_89 : f32
      %cst_90 = arith.constant 4.000000e-01 : f32
      %236 = arith.subf %235, %cst_90 : f32
      %237 = arith.mulf %236, %236 : f32
      %238 = arith.addf %234, %237 : f32
      %cst_91 = arith.constant 0.001953125 : f32
      %239 = arith.mulf %219, %cst_91 : f32
      %cst_92 = arith.constant 0.001953125 : f32
      %240 = arith.mulf %220, %cst_92 : f32
      %cst_93 = arith.constant 0.001953125 : f32
      %241 = arith.mulf %221, %cst_93 : f32
      %cst_94 = arith.constant 5.000000e-01 : f32
      %242 = arith.subf %240, %cst_94 : f32
      %243 = math.absf %242 : f32
      %cst_95 = arith.constant 2.000000e-01 : f32
      %244 = arith.subf %243, %cst_95 : f32
      %cst_96 = arith.constant 0.000000e+00 : f32
      %245 = arith.maximumf %244, %cst_96 : f32
      %cst_97 = arith.constant 5.000000e-01 : f32
      %246 = arith.subf %241, %cst_97 : f32
      %247 = math.absf %246 : f32
      %cst_98 = arith.constant 2.000000e-01 : f32
      %248 = arith.subf %247, %cst_98 : f32
      %cst_99 = arith.constant 0.000000e+00 : f32
      %249 = arith.maximumf %248, %cst_99 : f32
      %250 = arith.addf %245, %249 : f32
      %251 = arith.addf %222, %223 : f32
      %cst_100 = arith.constant 0.000000e+00 : f32
      %252 = arith.subf %cst_100, %251 : f32
      %cst_101 = arith.constant 2.000000e+00 : f32
      %253 = arith.divf %252, %cst_101 : f32
      %254 = arith.addf %239, %250 : f32
      %cst_102 = arith.constant 5.000000e-01 : f32
      %255 = arith.mulf %cst_102, %253 : f32
      %256 = arith.addf %254, %255 : f32
      %cst_103 = arith.constant 0.001953125 : f32
      %257 = arith.mulf %224, %cst_103 : f32
      %cst_104 = arith.constant 0.699999988 : f32
      %258 = arith.subf %257, %cst_104 : f32
      %259 = arith.mulf %258, %258 : f32
      %cst_105 = arith.constant 0.001953125 : f32
      %260 = arith.mulf %225, %cst_105 : f32
      %261 = arith.addf %259, %260 : f32
      %262 = arith.addf %226, %227 : f32
      %cst_106 = arith.constant 0.001953125 : f32
      %263 = arith.mulf %262, %cst_106 : f32
      %cst_107 = arith.constant 4.800000e+02 : f32
      %264 = arith.divf %228, %cst_107 : f32
      %cst_108 = arith.constant 4.800000e+02 : f32
      %265 = arith.divf %229, %cst_108 : f32
      %266 = arith.addf %264, %265 : f32
      %cst_109 = arith.constant 2.000000e-01 : f32
      %267 = arith.mulf %cst_109, %266 : f32
      %268 = arith.addf %239, %267 : f32
      %269 = arith.subf %240, %241 : f32
      %270 = math.absf %269 : f32
      %cst_110 = arith.constant 3.000000e-01 : f32
      %271 = arith.mulf %cst_110, %270 : f32
      %272 = arith.addf %268, %271 : f32
      %cst_111 = arith.constant 0.001953125 : f32
      %273 = arith.mulf %230, %cst_111 : f32
      %cst_112 = arith.constant 0.001953125 : f32
      %274 = arith.mulf %231, %cst_112 : f32
      %cst_113 = arith.constant 5.000000e-01 : f32
      %275 = arith.subf %274, %cst_113 : f32
      %276 = arith.mulf %275, %275 : f32
      %277 = arith.addf %273, %276 : f32
      %c0_114 = arith.constant 0 : index
      %278 = memref.load %arg1[%c0_114] : memref<8xf32, #tpu.memory_space<smem>>
      %279 = arith.addf %278, %232 : f32
      %c0_115 = arith.constant 0 : index
      %280 = memref.load %arg7[%c0_115] : memref<8xf32, #tpu.memory_space<smem>>
      memref.store %279, %arg7[%c0_115] : memref<8xf32, #tpu.memory_space<smem>>
      %c1_116 = arith.constant 1 : index
      %281 = memref.load %arg1[%c1_116] : memref<8xf32, #tpu.memory_space<smem>>
      %282 = arith.addf %281, %238 : f32
      %c1_117 = arith.constant 1 : index
      %283 = memref.load %arg7[%c1_117] : memref<8xf32, #tpu.memory_space<smem>>
      memref.store %282, %arg7[%c1_117] : memref<8xf32, #tpu.memory_space<smem>>
      %c2_118 = arith.constant 2 : index
      %284 = memref.load %arg1[%c2_118] : memref<8xf32, #tpu.memory_space<smem>>
      %285 = arith.addf %284, %256 : f32
      %c2_119 = arith.constant 2 : index
      %286 = memref.load %arg7[%c2_119] : memref<8xf32, #tpu.memory_space<smem>>
      memref.store %285, %arg7[%c2_119] : memref<8xf32, #tpu.memory_space<smem>>
      %c3_120 = arith.constant 3 : index
      %287 = memref.load %arg1[%c3_120] : memref<8xf32, #tpu.memory_space<smem>>
      %288 = arith.addf %287, %261 : f32
      %c3_121 = arith.constant 3 : index
      %289 = memref.load %arg7[%c3_121] : memref<8xf32, #tpu.memory_space<smem>>
      memref.store %288, %arg7[%c3_121] : memref<8xf32, #tpu.memory_space<smem>>
      %c4_122 = arith.constant 4 : index
      %290 = memref.load %arg1[%c4_122] : memref<8xf32, #tpu.memory_space<smem>>
      %291 = arith.addf %290, %263 : f32
      %c4_123 = arith.constant 4 : index
      %292 = memref.load %arg7[%c4_123] : memref<8xf32, #tpu.memory_space<smem>>
      memref.store %291, %arg7[%c4_123] : memref<8xf32, #tpu.memory_space<smem>>
      %c5_124 = arith.constant 5 : index
      %293 = memref.load %arg1[%c5_124] : memref<8xf32, #tpu.memory_space<smem>>
      %294 = arith.addf %293, %272 : f32
      %c5_125 = arith.constant 5 : index
      %295 = memref.load %arg7[%c5_125] : memref<8xf32, #tpu.memory_space<smem>>
      memref.store %294, %arg7[%c5_125] : memref<8xf32, #tpu.memory_space<smem>>
      %c6_126 = arith.constant 6 : index
      %296 = memref.load %arg1[%c6_126] : memref<8xf32, #tpu.memory_space<smem>>
      %297 = arith.addf %296, %277 : f32
      %c6_127 = arith.constant 6 : index
      %298 = memref.load %arg7[%c6_127] : memref<8xf32, #tpu.memory_space<smem>>
      memref.store %297, %arg7[%c6_127] : memref<8xf32, #tpu.memory_space<smem>>
      %c7_128 = arith.constant 7 : index
      %299 = memref.load %arg1[%c7_128] : memref<8xf32, #tpu.memory_space<smem>>
      %c7_129 = arith.constant 7 : index
      %300 = memref.load %arg7[%c7_129] : memref<8xf32, #tpu.memory_space<smem>>
      memref.store %299, %arg7[%c7_129] : memref<8xf32, #tpu.memory_space<smem>>
    } else {
    }
    return
  }
  func.func @transform_0(%arg0: i32) -> i32 {
    %c0_i32 = arith.constant 0 : i32
    %c0_i32_0 = arith.constant 0 : i32
    return %c0_i32 : i32
  }
  func.func @transform_1(%arg0: i32) -> (i32, i32, i32, i32) {
    %c0_i32 = arith.constant 0 : i32
    %c0_i32_0 = arith.constant 0 : i32
    %c0_i32_1 = arith.constant 0 : i32
    %c0_i32_2 = arith.constant 0 : i32
    return %arg0, %c0_i32, %c0_i32_0, %c0_i32_1 : i32, i32, i32, i32
  }
  func.func @transform_2(%arg0: i32) -> (i32, i32, i32, i32) {
    %c0_i32 = arith.constant 0 : i32
    %c0_i32_0 = arith.constant 0 : i32
    %c0_i32_1 = arith.constant 0 : i32
    %c0_i32_2 = arith.constant 0 : i32
    return %arg0, %c0_i32, %c0_i32_0, %c0_i32_1 : i32, i32, i32, i32
  }
  func.func @transform_3(%arg0: i32) -> (i32, i32, i32, i32) {
    %c0_i32 = arith.constant 0 : i32
    %c0_i32_0 = arith.constant 0 : i32
    %c0_i32_1 = arith.constant 0 : i32
    %c0_i32_2 = arith.constant 0 : i32
    return %arg0, %c0_i32, %c0_i32_0, %c0_i32_1 : i32, i32, i32, i32
  }
  func.func @transform_4(%arg0: i32) -> (i32, i32, i32, i32) {
    %c0_i32 = arith.constant 0 : i32
    %c0_i32_0 = arith.constant 0 : i32
    %c0_i32_1 = arith.constant 0 : i32
    %c0_i32_2 = arith.constant 0 : i32
    return %arg0, %c0_i32, %c0_i32_0, %c0_i32_1 : i32, i32, i32, i32
  }
  func.func @transform_5(%arg0: i32) -> (i32, i32, i32, i32) {
    %c0_i32 = arith.constant 0 : i32
    %c0_i32_0 = arith.constant 0 : i32
    %c0_i32_1 = arith.constant 0 : i32
    %c0_i32_2 = arith.constant 0 : i32
    return %arg0, %c0_i32, %c0_i32_0, %c0_i32_1 : i32, i32, i32, i32
  }
  func.func @transform_6(%arg0: i32) -> i32 {
    %c0_i32 = arith.constant 0 : i32
    %c0_i32_0 = arith.constant 0 : i32
    return %c0_i32 : i32
  }
}

</mosaic_0001>

<bundles_post_ra>
// kernel: tpu_custom_call.1
= control target key start
LH: loop header
LB: loop body
LE: loop exit
PB: predicated region body
PF: predicated region fallthrough
CT: control target
= control target key end

     0   :  { %s2288_s0 = inlined_call_operand.hbm [shape: f32[8], index: 0, kind: input, shape index: {}]   ;;  %s2289_s1 = inlined_call_operand.hbm [shape: f32[2,1,16,16], index: 1, kind: input, shape index: {}]   ;;  %s2290_s2 = inlined_call_operand.hbm [shape: f32[2,1,16,16], index: 2, kind: input, shape index: {}]   ;;  %s2291_s3 = inlined_call_operand.hbm [shape: f32[2,1,16,16], index: 3, kind: input, shape index: {}]   ;;  %s2292_s4 = inlined_call_operand.hbm [shape: f32[2,1,16,16], index: 4, kind: input, shape index: {}]   ;;  %s2293_s5 = inlined_call_operand.hbm [shape: f32[2,1,16,16], index: 5, kind: input, shape index: {}]   ;;  %s2294_s6 = inlined_call_operand.hbm [shape: f32[8], index: 6, kind: output, shape index: {}]  }
   0x1   :  { %2305 = sst [smem:[#allocation22_spill]] %s2289_s1 }
   0x2   :  { %2306 = sst [smem:[#allocation23_spill]] %s2290_s2 }
   0x3   :  { %2307 = sst [smem:[#allocation24_spill]] %s2292_s4 }
   0x4   :  { %11 = vsyncpa [#allocation5], 0 }
   0x5   :  { %12 = vsyncpa [#allocation4], 0 }
   0x6   :  { %14 = vsyncpa [#allocation4 + $0x1], 0 }
   0x7   :  { %15 = vsyncpa [#allocation9], 0 }
   0x8   :  { %17 = vsyncpa [#allocation9 + $0x1], 0 }
   0x9   :  { %18 = vsyncpa [#allocation12], 0 }
   0xa   :  { %20 = vsyncpa [#allocation12 + $0x1], 0 }
   0xb   :  { %21 = vsyncpa [#allocation6], 0  ;;  %s1718_s21 = smov 0   ;;  %s1720_s22 = smov 0  }
   0xc   :  { %s1722_s23 = smov 0   ;;  %s1724_s24 = smov 0  }
   0xd LB: > { %2308 = sst [smem:[#allocation20_spill]] %s1664_s23  ;;  %s1739_s25 = sadd.s32 1, %s1668_s24   ;;  %s1668_s24 = sphi %s1724_s24, %s2345_s24   ;;  %s1664_s23 = sphi %s1722_s23, %s2342_s23   ;;  %s1660_s22 = sphi %s1720_s22, %s2344_s22   ;;  %s1656_s21 = sphi %s1718_s21, %s2343_s21  }
   0xe   : > { %s55_s26 = sadd.s32 1, %s1664_s23  ;;  %s52_s27 = ssub.s32 %s1668_s24, %s1739_s25 }
   0xf   : > { %p62_p0 = scmp.ne.s32.totalorder %s1664_s23, %s1660_s22  ;;  %p53_p1 = scmp.eq.s32.totalorder %s52_s27, 0 }
  0x10   : > { %p63_p2 = scmp.eq.s32.totalorder %s1668_s24, 0  ;;  %p1385_p3 = scmp.lt.s32.totalorder %s1668_s24, 2 }
  0x11   : > { %s1749_s28 = scalar_select %p53_p1, %s1664_s23, %s55_s26  }
  0x12   : > { %p64_p4 = por %p63_p2, %p62_p0  ;;  %s2295_s29 = sand.u32 1, %s1664_s23  }
  0x13   : > { %2309 = sst [smem:[#allocation21_spill]] %s1749_s28  ;;  %s1754_s30 = sshll.u32 %s2295_s29, 4 }
  0x14   : > { %s1757_s7 = sshll.u32 %s1668_s24, 8  ;;  %p1759_p5 = pnand %p1385_p3, %p64_p4 }
  0x15   : > { %s247_s9 = sand.u32 1, %s1668_s24   ;;  %s2311_s2 = sld [smem:[#allocation23_spill]] }
  0x16   : > { %s251_s13 = scalar_lea.vmem [#allocation8], %s1754_s30  ;;  %s1775_s15 = scalar_lea.sflag [#allocation9], %s247_s9 }
  0x17   : > { %s258_s14 = sshll.u32 %s251_s13, 4  ;;  %p1781_p7 = pneg %p1759_p5  ;;  %s1771_s14 = int_to_ptr.vmem [resolvable:$true] %s258_s14 }
  0x1b   : > { %s1768_s12 = scalar_lea.hbm %s2311_s2, %s1757_s7  ;;  %s1448_s20 = scalar_lea.hbm %s2311_s2, 512 }
  0x1c   : > { %s1443_s16 = scalar_lea.hbm %s1768_s12, 256  ;;  %p1449_p10 = scmp.lt.u32.totalorder %s1768_s12, %s2311_s2 }
  0x1d   : > { %p1444_p6 = scmp.ne.s32.totalorder %s1768_s12, %s1443_s16  ;;  %p1450_p11 = scmp.lt.u32.totalorder %s1448_s20, %s1443_s16 }
  0x1e   : > { %p1452_p13 = scmp.lt.u32.totalorder %s1443_s16, %s1768_s12 }
  0x1f   : > { %p1446_p8 = pnand %p1781_p7, %p1444_p6  ;;  %p1451_p12 = por %p1450_p11, %p1449_p10 }
  0x21   : > { %p1447_p9 = pneg %p1446_p8  ;;  %p1453_p0 = por %p1452_p13, %p1451_p12 }
  0x23   : > { %p1454_p1 = pnand %p1453_p0, %p1447_p9 }
  0x25   : > { %1457 = shalt.err (!%p1454_p1)
}
  0x26   : > { %s1458_s10 = scalar_lea.vmem %s1771_s14, 256  ;;  %s1670_s11 = smov [#allocation8]  }
  0x27   : > { %p1459_p2 = scmp.ne.s32.totalorder %s1771_s14, %s1458_s10  ;;  %s1463_s13 = sshll.u32 %s1670_s11, 4  ;;  %s1464_s13 = int_to_ptr.vmem [resolvable:$false] %s1463_s13 }
  0x28   : > { %s1465_s18 = scalar_lea.vmem %s1464_s13, 512  ;;  %p1466_p6 = scmp.lt.s32.totalorder %s1771_s14, %s1464_s13 }
  0x29   : > { %p1461_p3 = pnand %p1459_p2, %p1781_p7  ;;  %p1467_p8 = scmp.lt.s32.totalorder %s1465_s18, %s1458_s10 }
  0x2b   : > { %p1462_p4 = pneg %p1461_p3  ;;  %p1468_p10 = por %p1467_p8, %p1466_p6 }
  0x2d   : > { %p1469_p11 = pnand %p1468_p10, %p1462_p4 }
  0x2f   : > { %1472 = shalt.err (!%p1469_p11)
}
  0x30   : > { %s2296_s16 = smov 128   ;;  %s2298_s19 = smov 8  }
  0x31   : > { %1374 = dma.hbm_to_vmem [thread:$0]  (!%p1759_p5), %s1768_s12, 256, %s1771_s14, %s1775_s15, %s2296_s16, %s2296_s16, %s2298_s19  }
  0x32   : > { %s2313_s4 = sld [smem:[#allocation24_spill]]  ;;  %s293_s10 = scalar_lea.vmem [#allocation11], %s1754_s30 }
  0x33   : > { %s300_s11 = sshll.u32 %s293_s10, 4  ;;  %s1819_s13 = scalar_lea.sflag [#allocation12], %s247_s9  ;;  %s1815_s11 = int_to_ptr.vmem [resolvable:$true] %s300_s11 }
  0x38   : > { %s1812_s27 = scalar_lea.hbm %s2313_s4, %s1757_s7  ;;  %s1478_s20 = scalar_lea.hbm %s2313_s4, 512 }
  0x39   : > { %s1473_s18 = scalar_lea.hbm %s1812_s27, 256  ;;  %p1479_p0 = scmp.lt.u32.totalorder %s1812_s27, %s2313_s4 }
  0x3a   : > { %p1474_p9 = scmp.ne.s32.totalorder %s1812_s27, %s1473_s18  ;;  %p1480_p1 = scmp.lt.u32.totalorder %s1478_s20, %s1473_s18 }
  0x3b   : > { %p1482_p3 = scmp.lt.u32.totalorder %s1473_s18, %s1812_s27 }
  0x3c   : > { %p1476_p12 = pnand %p1474_p9, %p1781_p7  ;;  %p1481_p2 = por %p1480_p1, %p1479_p0 }
  0x3e   : > { %p1477_p13 = pneg %p1476_p12  ;;  %p1483_p4 = por %p1482_p3, %p1481_p2 }
  0x40   : > { %p1484_p6 = pnand %p1483_p4, %p1477_p13 }
  0x42   : > { %1487 = shalt.err (!%p1484_p6)
}
  0x43   : > { %s1488_s9 = scalar_lea.vmem %s1815_s11, 256  ;;  %s1673_s10 = smov [#allocation11]  }
  0x44   : > { %p1489_p8 = scmp.ne.s32.totalorder %s1815_s11, %s1488_s9  ;;  %s1493_s12 = sshll.u32 %s1673_s10, 4  ;;  %s1494_s12 = int_to_ptr.vmem [resolvable:$false] %s1493_s12 }
  0x45   : > { %s1495_s29 = scalar_lea.vmem %s1494_s12, 512  ;;  %p1496_p9 = scmp.lt.s32.totalorder %s1815_s11, %s1494_s12 }
  0x46   : > { %p1491_p10 = pnand %p1489_p8, %p1781_p7  ;;  %p1497_p12 = scmp.lt.s32.totalorder %s1495_s29, %s1488_s9 }
  0x48   : > { %p1492_p11 = pneg %p1491_p10  ;;  %p1498_p0 = por %p1497_p12, %p1496_p9 }
  0x4a   : > { %p1499_p1 = pnand %p1498_p0, %p1492_p11 }
  0x4c   : > { %1502 = shalt.err (!%p1499_p1)
}
  0x4d   : > { %1380 = dma.hbm_to_vmem [thread:$0]  (!%p1759_p5), %s1812_s27, 256, %s1815_s11, %s1819_s13, %s2296_s16, %s2296_s16, %s2298_s19  }
  0x4e   : > { %s1847_s18 = sadd.s32 4294967295, %s1668_s24   ;;  %p68_p13 = scmp.ne.s32.totalorder %s1660_s22, %s1656_s21 }
  0x4f   : > { %p2300_p2 = scmp.eq.s32.totalorder %s1847_s18, 0  ;;  %p1190_p3 = scmp.ge.s32.totalorder %s1668_s24, 1 }
  0x50   : > { %p204_p4 = scmp.lt.s32.totalorder %s1668_s24, 3  ;;  %s2316_s1 = sld [smem:[#allocation22_spill]] }
  0x51   : > { %p1856_p6 = por %p2300_p2, %p68_p13  ;;  %s230_s21 = scalar_lea.vmem [#allocation7], %s1754_s30 }
  0x52   : > { %p1860_p8 = pnand %p1190_p3, %p204_p4  ;;  %s237_s24 = sshll.u32 %s230_s21, 4  ;;  %s1879_s24 = int_to_ptr.vmem [resolvable:$true] %s237_s24 }
  0x53   : > { %s2314_s14 = scalar_select %p1856_p6, 1, 0 }
  0x54   : > { %s2315_s20 = scalar_select %p1860_p8, 1, 0 }
  0x55   : > { %p1364_p10 = pneg %p1860_p8  ;;  %s2318_s10 = sand.u32 1, %s1664_s23  }
  0x56   : > { %s1870_s26 = scalar_lea.hbm %s2316_s1, %s1757_s7  ;;  %s1883_s12 = scalar_lea.sflag [#allocation4], %s2318_s10 }
  0x57   : > { %p1875_p11 = pnand %p1364_p10, %p2300_p2  ;;  %s1503_s29 = scalar_lea.hbm %s1870_s26, 256 }
  0x58   : > { %p1504_p9 = scmp.ne.s32.totalorder %s1870_s26, %s1503_s29  ;;  %s1508_s16 = scalar_lea.hbm %s2316_s1, 512 }
  0x59   : > { %s2317_s9 = scalar_select %p1875_p11, 1, 0 }
  0x5a   : > { %p1506_p12 = pnand %p1504_p9, %p1781_p7  ;;  %p1509_p1 = scmp.lt.u32.totalorder %s1870_s26, %s2316_s1 }
  0x5b   : > { %p1510_p13 = scmp.lt.u32.totalorder %s1508_s16, %s1503_s29  ;;  %p1512_p4 = scmp.lt.u32.totalorder %s1503_s29, %s1870_s26 }
  0x5c   : > { %p1507_p0 = pneg %p1506_p12 }
  0x5d   : > { %p1511_p3 = por %p1510_p13, %p1509_p1 }
  0x5f   : > { %p1513_p10 = por %p1512_p4, %p1511_p3 }
  0x61   : > { %p1514_p2 = pnand %p1513_p10, %p1507_p0 }
  0x63   : > { %1517 = shalt.err (!%p1514_p2)
}
  0x64   : > { %s1518_s10 = scalar_lea.vmem %s1879_s24, 256  ;;  %s1674_s27 = smov [#allocation7]  }
  0x65   : > { %p1519_p9 = scmp.ne.s32.totalorder %s1879_s24, %s1518_s10  ;;  %s1523_s11 = sshll.u32 %s1674_s27, 4  ;;  %s1524_s11 = int_to_ptr.vmem [resolvable:$false] %s1523_s11 }
  0x66   : > { %s1525_s19 = scalar_lea.vmem %s1524_s11, 512  ;;  %p1526_p8 = scmp.lt.s32.totalorder %s1879_s24, %s1524_s11 }
  0x67   : > { %p1521_p12 = pnand %p1519_p9, %p1781_p7  ;;  %p1527_p11 = scmp.lt.s32.totalorder %s1525_s19, %s1518_s10 }
  0x69   : > { %p1522_p6 = pneg %p1521_p12  ;;  %p1528_p1 = por %p1527_p11, %p1526_p8 }
  0x6b   : > { %p1529_p13 = pnand %p1528_p1, %p1522_p6 }
  0x6d   : > { %1532 = shalt.err (!%p1529_p13)
}
  0x6e   : > { %s2319_s16 = smov 8   ;;  %s2320_s29 = smov 128  }
  0x6f   : > { %1371 = dma.hbm_to_vmem [thread:$0]  (!%p1759_p5), %s1870_s26, 256, %s1879_s24, %s1883_s12, %s2320_s29, %s2320_s29, %s2319_s16  }
  0x70   : > { %s1914_s1 = scalar_lea.hbm %s2291_s3, %s1757_s7  ;;  %s1533_s19 = scalar_lea.hbm %s2288_s0, 16 }
  0x71   : > { %p1534_p2 = scmp.ne.s32.totalorder %s2288_s0, %s1533_s19  ;;  %p2321_p6 = scmp.ne.s32.totalorder %s2317_s9, 0 }
  0x72   : > { %p1540_p3 = scmp.lt.u32.totalorder %s1533_s19, %s2288_s0 }
  0x73   : > { %p1535_p8 = pneg %p2321_p6 }
  0x75   : > { %p1536_p11 = pnand %p1535_p8, %p1534_p2 }
  0x77   : > { %p1537_p0 = pneg %p1536_p11 }
  0x79   : > { %p1542_p4 = pnand %p1540_p3, %p1537_p0 }
  0x7b   : > { %1545 = shalt.err (!%p1542_p4)
}
  0x7c   : > { %s1675_s26 = smov [#allocation3]   ;;  %s272_s2 = scalar_lea.vmem [#allocation10], %s1754_s30 }
  0x7d   : > { %1367 = dma.hbm_to_smem (!%p2321_p6), %s2288_s0, 16, %s1675_s26, [#allocation5]  }
  0x7e   : > { %s279_s4 = sshll.u32 %s272_s2, 4  ;;  %s1939_s21 = scalar_lea.hbm %s2293_s5, %s1757_s7  ;;  %s1933_s4 = int_to_ptr.vmem [resolvable:$true] %s279_s4 }
  0x7f   : > { %s1546_s9 = scalar_lea.hbm %s1914_s1, 256  ;;  %s1551_s11 = scalar_lea.hbm %s2291_s3, 512 }
  0x80   : > { %p1547_p10 = scmp.ne.s32.totalorder %s1914_s1, %s1546_s9  ;;  %p1552_p1 = scmp.lt.u32.totalorder %s1914_s1, %s2291_s3 }
  0x81   : > { %p1553_p13 = scmp.lt.u32.totalorder %s1551_s11, %s1546_s9  ;;  %p1555_p6 = scmp.lt.u32.totalorder %s1546_s9, %s1914_s1 }
  0x82   : > { %p1549_p9 = pnand %p1547_p10, %p1781_p7 }
  0x83   : > { %p1554_p2 = por %p1553_p13, %p1552_p1 }
  0x84   : > { %p1550_p12 = pneg %p1549_p9 }
  0x85   : > { %p1556_p8 = por %p1555_p6, %p1554_p2 }
  0x87   : > { %p1557_p11 = pnand %p1556_p8, %p1550_p12 }
  0x89   : > { %1560 = shalt.err (!%p1557_p11)
}
  0x8a   : > { %s1561_s7 = scalar_lea.vmem %s1933_s4, 256  ;;  %s1676_s24 = smov [#allocation10]  }
  0x8b   : > { %p1562_p0 = scmp.ne.s32.totalorder %s1933_s4, %s1561_s7  ;;  %s1566_s12 = sshll.u32 %s1676_s24, 4  ;;  %s1567_s12 = int_to_ptr.vmem [resolvable:$false] %s1566_s12 }
  0x8c   : > { %s1568_s2 = scalar_lea.vmem %s1567_s12, 512  ;;  %p1569_p10 = scmp.lt.s32.totalorder %s1933_s4, %s1567_s12 }
  0x8d   : > { %p1564_p3 = pnand %p1562_p0, %p1781_p7  ;;  %p1570_p9 = scmp.lt.s32.totalorder %s1568_s2, %s1561_s7 }
  0x8f   : > { %p1565_p4 = pneg %p1564_p3  ;;  %p1571_p1 = por %p1570_p9, %p1569_p10 }
  0x91   : > { %p1572_p13 = pnand %p1571_p1, %p1565_p4 }
  0x93   : > { %1575 = shalt.err (!%p1572_p13)
}
  0x94   : > { %1377 = dma.hbm_to_vmem [thread:$0]  (!%p1759_p5), %s1914_s1, 256, %s1933_s4, %s1775_s15, %s2320_s29, %s2320_s29, %s2319_s16  }
  0x95   : > { %s314_s23 = scalar_lea.vmem [#allocation13], %s1754_s30  ;;  %s1576_s9 = scalar_lea.hbm %s1939_s21, 256 }
  0x96   : > { %s321_s28 = sshll.u32 %s314_s23, 4  ;;  %p1577_p12 = scmp.ne.s32.totalorder %s1939_s21, %s1576_s9  ;;  %s1967_s28 = int_to_ptr.vmem [resolvable:$true] %s321_s28 }
  0x97   : > { %s1581_s11 = scalar_lea.hbm %s2293_s5, 512  ;;  %p1582_p8 = scmp.lt.u32.totalorder %s1939_s21, %s2293_s5 }
  0x98   : > { %p1579_p2 = pnand %p1577_p12, %p1781_p7  ;;  %p1583_p11 = scmp.lt.u32.totalorder %s1581_s11, %s1576_s9 }
  0x99   : > { %p1585_p3 = scmp.lt.u32.totalorder %s1576_s9, %s1939_s21 }
  0x9a   : > { %p1580_p6 = pneg %p1579_p2  ;;  %p1584_p0 = por %p1583_p11, %p1582_p8 }
  0x9c   : > { %p1586_p4 = por %p1585_p3, %p1584_p0 }
  0x9e   : > { %p1587_p10 = pnand %p1586_p4, %p1580_p6 }
  0xa0   : > { %1590 = shalt.err (!%p1587_p10)
}
  0xa1   : > { %s1591_s1 = scalar_lea.vmem %s1967_s28, 256  ;;  %s1677_s30 = smov [#allocation13]  }
  0xa2   : > { %p1592_p9 = scmp.ne.s32.totalorder %s1967_s28, %s1591_s1  ;;  %s1596_s15 = sshll.u32 %s1677_s30, 4  ;;  %s1597_s15 = int_to_ptr.vmem [resolvable:$false] %s1596_s15 }
  0xa3   : > { %s1598_s4 = scalar_lea.vmem %s1597_s15, 512  ;;  %p1599_p12 = scmp.lt.s32.totalorder %s1967_s28, %s1597_s15 }
  0xa4   : > { %p1594_p1 = pnand %p1592_p9, %p1781_p7  ;;  %p1600_p2 = scmp.lt.s32.totalorder %s1598_s4, %s1591_s1 }
  0xa6   : > { %p1595_p13 = pneg %p1594_p1  ;;  %p1601_p8 = por %p1600_p2, %p1599_p12 }
  0xa8   : > { %p1602_p11 = pnand %p1601_p8, %p1595_p13 }
  0xaa   : > { %1605 = shalt.err (!%p1602_p11)
}
  0xab   : > { %1383 = dma.hbm_to_vmem [thread:$0]  (!%p1759_p5), %s1939_s21, 256, %s1967_s28, %s1819_s13, %s2320_s29, %s2320_s29, %s2319_s16  }
  0xac   : > { %p2322_p7 = scmp.ne.s32.totalorder %s2315_s20, 0 }
  0xad   : > { %p2323_p6 = scmp.eq.s32.totalorder (!%p2322_p7), %s1847_s18, 0 }
  0xae   : > { %333 = sbr.rel (%p2322_p7) target bundleno = 947 (0x3b3), region = 44 }
  0xb5   : > { %1635 = dma.done.wait (%p2323_p6), [#allocation5], 16   ;;  %p2324_p0 = pmov %p2323_p6 }
  0xb6   : > { %s339_s17 = sand.u32 1, %s1660_s22   ;;  %p2325_p3 = scmp.ne.s32.totalorder %s2314_s14, 0 }
  0xb7   : > { %1637 = vsyncadd (%p2324_p0), [#allocation5], 4294967280  ;;  %s2001_s8 = sshll.u32 %s339_s17, 4  ;;  %s340_s7 = scalar_lea.sflag [#allocation4], %s339_s17 }
  0xb8   : > { %s343_s24 = scalar_lea.vmem [#allocation7], %s2001_s8 }
  0xb9   : > { %1639 = dma.done.wait (%p2325_p3), %s340_s7, 256  }
  0xba   : > { %1641 = vsyncadd (%p2325_p3), %s340_s7, 4294967040  ;;  %s348_s13 = sand.u32 1, %s1847_s18   ;;  %s352_s16 = scalar_lea.vmem [#allocation8], %s2001_s8 }
  0xbb   : > { %s349_s20 = scalar_lea.sflag [#allocation9], %s348_s13 }
  0xbc   : > { %1643 = dma.done.wait (%p2325_p3), %s349_s20, 512  }
  0xbd   : > { %1645 = vsyncadd (%p2325_p3), %s349_s20, 4294966784  ;;  %s361_s29 = scalar_lea.vmem [#allocation10], %s2001_s8  ;;  %s367_s21 = scalar_lea.sflag [#allocation12], %s348_s13 }
  0xbe   : > { %s370_s12 = scalar_lea.vmem [#allocation11], %s2001_s8 }
  0xbf   : > { %1647 = dma.done.wait (%p2325_p3), %s367_s21, 512  }
  0xc0   : > { %1649 = vsyncadd (%p2325_p3), %s367_s21, 4294966784  ;;  %s379_s2 = scalar_lea.vmem [#allocation13], %s2001_s8 }
  0xc1   : > { %384 = sfence }
  0xc2   : > { %v2021_v0 = vld [vmem:[%s343_s24] sm:$0xff]  ;;  %v2023_v1 = vld [vmem:[%s343_s24 + $0x8] sm:$0xff]  ;;  %vm474_vm0 = vcmask 130048   ;;  %s1678_s14 = smov 0.0   ;;  %p2326_p5 = pmov %p2324_p0  ;;  %vm704_vm1 = vcmask 1040384   ;;  %vm726_vm2 = vcmask 1046528  }
  0xc3   : > { %v2025_v2 = vld [vmem:[%s352_s16] sm:$0xff]  ;;  %v1216_v3 = vadd.f32 -0.8, %v2021_v0  ;;  %v1217_v4 = vadd.f32 -0.8, %v2023_v1  ;;  %v2029_v5 = vld [vmem:[%s352_s16 + $0x8] sm:$0xff]  ;;  %p2327_p4 = pmov %p2324_p0  ;;  %p2328_p10 = pmov %p2324_p0 }
  0xc4   : > { %v519_v6 = vsel %vm474_vm0, %v2025_v2, 0.0  ;;  %v520_v7 = vsel %vm474_vm0, %v2029_v5, 0.0  ;;  %v2035_v8 = vld [vmem:[%s361_s29] sm:$0xff]  ;;  %v2037_v9 = vld [vmem:[%s361_s29 + $0x8] sm:$0xff]  ;;  %v487_v11 = vadd.f32 1e-08, %v2025_v2  ;;  %p2329_p9 = pmov %p2324_p0  ;;  %p2330_p1 = pmov %p2324_p0 }
  0xc5   : > { %v2039_v10 = vld [vmem:[%s370_s12] sm:$0xff]  ;;  %v2042_v12 = vmul.f32 %v1216_v3, %v1216_v3  ;;  %v2044_v13 = vmul.f32 %v1217_v4, %v1217_v4  ;;  %v521_v14 = vadd.f32 %v520_v7, %v519_v6  ;;  %v2046_v15 = vld [vmem:[%s370_s12 + $0x8] sm:$0xff]  ;;  %v488_v18 = vadd.f32 1e-08, %v2029_v5  ;;  %1335 = sst [smem:[#allocation2]] (%p2326_p5), %s1678_s14  ;;  %p2331_p13 = pmov %p2324_p0 }
  0xc6   : > { %v531_v16 = vadd.f32 %v2039_v10, %v2035_v8  ;;  %v532_v17 = vadd.f32 %v2046_v15, %v2037_v9  ;;  %1431 = vlog2.f32 %v487_v11  ;;  %v495_v19 = vsub.f32 1.0, %v2025_v2  ;;  %1336 = sst [smem:[#allocation2 + $0x1]] (%p2327_p4), %s1678_s14  ;;  %p2332_p12 = pmov %p2324_p0 }
  0xc7   : > { %v475_v20 = vsel %vm474_vm0, %v2042_v12, 0.0  ;;  %v476_v21 = vsel %vm474_vm0, %v2044_v13, 0.0  ;;  %522 = vadd.xlane.f32.xlu1 %v521_v14  ;;  %v496_v23 = vsub.f32 1.0, %v2029_v5  ;;  %1433 = vlog2.f32 %v488_v18  ;;  %1337 = sst [smem:[#allocation2 + $0x2]] (%p2328_p10), %s1678_s14  ;;  %p2333_p2 = pmov %p2324_p0 }
  0xc8   : > { %v1218_v22 = vadd.f32 -1.0, %v531_v16  ;;  %v477_v24 = vadd.f32 %v476_v21, %v475_v20  ;;  %v1219_v25 = vadd.f32 -1.0, %v532_v17  ;;  %v497_v26 = vadd.f32 1e-08, %v495_v19  ;;  %1338 = sst [smem:[#allocation2 + $0x3]] (%p2329_p9), %s1678_s14  ;;  %p2334_p8 = pmov %p2324_p0 }
  0xc9   : > { %v498_v28 = vadd.f32 1e-08, %v496_v23  ;;  %v561_v32 = vsel %vm474_vm0, %v2039_v10, 0.0  ;;  %v562_v33 = vsel %vm474_vm0, %v2046_v15, 0.0  ;;  %v549_v52 = vsel %vm474_vm0, %v2035_v8, 0.0  ;;  %1339 = sst [smem:[#allocation2 + $0x4]] (%p2330_p1), %s1678_s14  ;;  %p2335_p11 = pmov %p2324_p0 }
  0xca   : > { %v535_v27 = vmul.f32 %v1218_v22, %v1218_v22  ;;  %478 = vadd.xlane.f32.xlu0 %v477_v24  ;;  %v536_v29 = vmul.f32 %v1219_v25, %v1219_v25  ;;  %1435 = vlog2.f32 %v497_v26  ;;  %v563_v35 = vadd.f32 %v562_v33, %v561_v32  ;;  %1340 = sst [smem:[#allocation2 + $0x5]] (%p2331_p13), %s1678_s14  ;;  %p2336_p7 = pmov %p2324_p0 }
  0xcb   : > { %1437 = vlog2.f32 %v498_v28  ;;  %v550_v53 = vsel %vm474_vm0, %v2037_v9, 0.0  ;;  %1341 = sst [smem:[#allocation2 + $0x6]] (%p2332_p12), %s1678_s14  ;;  %p2337_p6 = pmov %p2324_p0  ;;  %vm733_vm3 = vcmask 129024   ;;  %vm753_vm6 = vcmask 121856  }
  0xcc   : > { %v537_v30 = vsel %vm474_vm0, %v535_v27, 0.0  ;;  %v538_v31 = vsel %vm474_vm0, %v536_v29, 0.0  ;;  %v551_v55 = vadd.f32 %v550_v53, %v549_v52  ;;  %1342 = sst [smem:[#allocation2 + $0x7]] (%p2333_p2), %s1678_s14  ;;  %p2338_p3 = pmov %p2324_p0  ;;  %vm848_vm7 = vcmp.gt.f32.partialorder %v2021_v0, 0.7 }
  0xcd   : > { %v539_v34 = vadd.f32 %v538_v31, %v537_v30  ;;  %1343 = sst [smem:[#allocation2 + $0x8]] (%p2334_p8), %s1678_s14  ;;  %p2339_p5 = pmov %p2324_p0  ;;  %vm849_vm8 = vcmp.gt.f32.partialorder %v2023_v1, 0.7 }
  0xce   : > { %1344 = sst [smem:[#allocation2 + $0x9]] (%p2335_p11), %s1678_s14  ;;  %p2340_p4 = pmov %p2324_p0 }
  0xcf   : > { %540 = vadd.xlane.f32.xlu1 %v539_v34  ;;  %1345 = sst [smem:[#allocation2 + $0xa]] (%p2336_p7), %s1678_s14  ;;  %s1679_s23 = smov 1  }
  0xd0   : > { %v1432_v36 = vpop.eup %1431  ;;  %1346 = sst [smem:[#allocation2 + $0xb]] (%p2337_p6), %s1678_s14  ;;  %s868_s28 = sld [smem:[#allocation2]] }
  0xd1   : > { %v490_v37 = vmul.f32 0.6931472, %v1432_v36  ;;  %v1434_v38 = vpop.eup %1433  ;;  %1347 = sst [smem:[#allocation2 + $0xc]] (%p2324_p0), %s1678_s14  ;;  %s1004_s9 = sld [smem:[#allocation3]] }
  0xd2   : > { %v492_v39 = vmul.f32 0.6931472, %v1434_v38  ;;  %1348 = sst [smem:[#allocation2 + $0xd]] (%p2338_p3), %s1678_s14  ;;  %p1388_p10 = scmp.eq.s32.totalorder %s1847_s18, 1 }
  0xd3   : > { %564 = vadd.xlane.f32.xlu1 %v563_v35  ;;  %v493_v42 = vmul.f32 %v490_v37, %v2025_v2  ;;  %1349 = sst [smem:[#allocation2 + $0xe]] (%p2339_p5), %s1678_s14  ;;  %s1226_s26 = sld [smem:[#allocation2 + $0x1]] }
  0xd4   : > { %v1436_v40 = vpop.eup %1435  ;;  %v494_v44 = vmul.f32 %v492_v39, %v2029_v5  ;;  %1350 = sst [smem:[#allocation2 + $0xf]] (%p2340_p4), %s1678_s14  ;;  %s1227_s1 = sld [smem:[#allocation2 + $0x2]] }
  0xd5   : > { %v1438_v41 = vpop.eup %1437  ;;  %v500_v43 = vmul.f32 0.6931472, %v1436_v40  ;;  %s1228_s30 = sld [smem:[#allocation2 + $0x3]]  ;;  %s1229_s15 = sld [smem:[#allocation2 + $0x4]] }
  0xd6   : > { %v502_v45 = vmul.f32 0.6931472, %v1438_v41  ;;  %s2130_s17 = sld [smem:[#allocation2 + $0x5]]  ;;  %s1264_s20 = sld [smem:[#allocation3 + $0x1]] }
  0xd7   : > { %v503_v46 = vmul.f32 %v500_v43, %v495_v19 }
  0xd8   : > { %v504_v47 = vmul.f32 %v502_v45, %v496_v23 }
  0xd9   : > { %v505_v48 = vadd.f32 %v503_v46, %v493_v42 }
  0xda   : > { %v506_v49 = vadd.f32 %v504_v47, %v494_v44 }
  0xdb   : > { %v507_v50 = vsel %vm474_vm0, %v505_v48, 0.0 }
  0xdc   : > { %v508_v51 = vsel %vm474_vm0, %v506_v49, 0.0 }
  0xdd   : > { %v509_v54 = vadd.f32 %v508_v51, %v507_v50 }
  0xdf   : > { %510 = vadd.xlane.f32.xlu0 %v509_v54 }
  0xe3   : > { %552 = vadd.xlane.f32.xlu0 %v551_v55 }
  0xe4   : > { %714 = vrot.lane.b32.xlu1 %v2035_v8, %s1679_s23 }
  0xe8   : > { %777 = vrot.lane.b32.xlu1 %v2039_v10, %s1679_s23 }
  0xec   : > { %779 = vrot.lane.b32.xlu1 %v2046_v15, %s1679_s23 }
 0x154   : > { %v523_v58 = vpop.xlane.xlu1 %522 }
 0x155   : > { %v524_v6 = vrot.slane %v523_v58, 4 }
 0x157   : > { %v479_v56 = vpop.xlane.xlu0 %478  ;;  %v525_v14 = vadd.f32 %v524_v6, %v523_v58  ;;  %v469_v6 = vld [vmem:[%s379_s2 + $0x8] sm:$0xff] }
 0x158   : > { %v480_v57 = vrot.slane %v479_v56, 4 }
 0x159   : > { %v526_v18 = vrot.slane %v525_v14, 2 }
 0x15a   : > { %v481_v59 = vadd.f32 %v480_v57, %v479_v56 }
 0x15b   : > { %v527_v25 = vadd.f32 %v526_v18, %v525_v14 }
 0x15c   : > { %v482_v60 = vrot.slane %v481_v59, 2  ;;  %v541_v62 = vpop.xlane.xlu1 %540 }
 0x15d   : > { %v542_v7 = vrot.slane %v541_v62, 4  ;;  %v528_v32 = vrot.slane %v527_v25, 1 }
 0x15e   : > { %v483_v61 = vadd.f32 %v482_v60, %v481_v59 }
 0x15f   : > { %v543_v16 = vadd.f32 %v542_v7, %v541_v62  ;;  %v529_v39 = vadd.f32 %v528_v32, %v527_v25  ;;  %v652_v7 = vmul.f32 %v2039_v10, %v2039_v10 }
 0x160   : > { %v484_v63 = vrot.slane %v483_v61, 1  ;;  %v565_v4 = vpop.xlane.xlu1 %564 }
 0x161   : > { %v566_v11 = vrot.slane %v565_v4, 4  ;;  %v544_v20 = vrot.slane %v543_v16, 2 }
 0x162   : > { %v485_v3 = vadd.f32 %v484_v63, %v483_v61  ;;  %v650_v63 = vmul.f32 %v2035_v8, %v2035_v8 }
 0x163   : > { %v567_v17 = vadd.f32 %v566_v11, %v565_v4  ;;  %v545_v28 = vadd.f32 %v544_v20, %v543_v16  ;;  %v468_v4 = vld [vmem:[%s379_s2] sm:$0xff]  ;;  %v653_v11 = vmul.f32 %v2046_v15, %v2046_v15  ;;  %v1221_v16 = vadd.f32 -0.6, %v469_v6  ;;  %s1231_s2 = sld [smem:[#allocation2 + $0x6]] }
 0x164   : > { %1280 = vpush %v485_v3  ;;  %v715_v60 = vpop.permute.xlu1 %714  ;;  %v651_v3 = vmul.f32 %v2037_v9, %v2037_v9  ;;  %v1220_v14 = vadd.f32 -0.6, %v468_v4  ;;  %v654_v18 = vadd.f32 %v652_v7, %v650_v63  ;;  %v637_v63 = vmul.f32 %v2029_v5, %v2023_v1 }
 0x165   : > { %v568_v22 = vrot.slane %v567_v17, 2  ;;  %v546_v35 = vrot.slane %v545_v28, 1  ;;  %v720_v61 = vsub.f32 %v2035_v8, %v715_v60 }
 0x166   : > { %v672_v20 = vmul.f32 %v1220_v14, %v1220_v14  ;;  %v639_v14 = vsel %vm474_vm0, %v637_v63, 0.0 }
 0x167   : > { %v569_v29 = vadd.f32 %v568_v22, %v567_v17  ;;  %v547_v40 = vadd.f32 %v546_v35, %v545_v28  ;;  %v722_v62 = vand.u32 2147483647, %v720_v61  ;;  %v686_v17 = vsub.f32 %v468_v4, %v2021_v0 }
 0x168   : > { %v687_v22 = vsub.f32 %v469_v6, %v2023_v1  ;;  %v674_v25 = vsel %vm474_vm0, %v672_v20, 0.0  ;;  %v778_v35 = vpop.permute.xlu1 %777 }
 0x169   : > { %v570_v36 = vrot.slane %v569_v29, 1 }
 0x16b   : > { %v571_v42 = vadd.f32 %v570_v36, %v569_v29 }
 0x16c   : > { %v511_v19 = vpop.xlane.xlu0 %510 }
 0x16d   : > { %v512_v21 = vrot.slane %v511_v19, 4 }
 0x16f   : > { %v513_v23 = vadd.f32 %v512_v21, %v511_v19  ;;  %v655_v19 = vadd.f32 %v653_v11, %v651_v3  ;;  %v673_v21 = vmul.f32 %v1221_v16, %v1221_v16 }
 0x170   : > { %v553_v24 = vpop.xlane.xlu0 %552 }
 0x171   : > { %v514_v26 = vrot.slane %v513_v23, 2  ;;  %v554_v27 = vrot.slane %v553_v24, 4  ;;  %v675_v29 = vsel %vm474_vm0, %v673_v21, 0.0 }
 0x172   : > { %v676_v32 = vadd.f32 %v675_v29, %v674_v25 }
 0x173   : > { %v555_v30 = vadd.f32 %v554_v27, %v553_v24  ;;  %v515_v31 = vadd.f32 %v514_v26, %v513_v23  ;;  %v656_v23 = vmul.f32 %v654_v18, %v2042_v12  ;;  %v657_v24 = vmul.f32 %v655_v19, %v2044_v13 }
 0x174   : > { %v688_v26 = vmul.f32 %v686_v17, %v686_v17 }
 0x175   : > { %v556_v33 = vrot.slane %v555_v30, 2  ;;  %v516_v34 = vrot.slane %v515_v31, 1  ;;  %v658_v27 = vsel %vm474_vm0, %v656_v23, 0.0  ;;  %v659_v28 = vsel %vm474_vm0, %v657_v24, 0.0 }
 0x176   : > { %v829_v23 = vmul.f32 %v2029_v5, %v2029_v5 }
 0x177   : > { %v517_v37 = vadd.f32 %v516_v34, %v515_v31  ;;  %v557_v38 = vadd.f32 %v556_v33, %v555_v30  ;;  %v689_v30 = vmul.f32 %v687_v22, %v687_v22  ;;  %v660_v31 = vadd.f32 %v659_v28, %v658_v27 }
 0x178   : > { %v690_v33 = vsel %vm474_vm0, %v688_v26, 0.0  ;;  %v828_v22 = vmul.f32 %v2025_v2, %v2025_v2 }
 0x179   : > { %1282 = vpush %v517_v37  ;;  %v558_v41 = vrot.slane %v557_v38, 1  ;;  %v691_v34 = vsel %vm474_vm0, %v689_v30, 0.0 }
 0x17a   : > { %1284 = vpush %v529_v39  ;;  %v692_v12 = vadd.f32 %v691_v34, %v690_v33 }
 0x17b   : > { %1286 = vpush %v547_v40  ;;  %v559_v43 = vadd.f32 %v558_v41, %v557_v38  ;;  %v783_v41 = vsub.f32 %v2039_v10, %v778_v35 }
 0x17d   : > { %1288 = vpush %v559_v43 }
 0x17e   : > { %1290 = vpush %v571_v42  ;;  %v780_v42 = vpop.permute.xlu1 %779 }
 0x195   : > { %s1281_s27 = spop %1280 }
 0x196   : > { %s869_s10 = sadd.f32 %s1281_s27, %s868_s28 }
 0x198   : > { %871 = sst [smem:[#allocation2]] %s869_s10  ;;  %s952_s11 = smul.f32 0.001953125, %s869_s10 }
 0x19a   : > { %s1005_s19 = sadd.f32 %s1004_s9, %s952_s11 }
 0x19c   : > { %1352 = sst [smem:[#allocation14]] (%p1388_p10), %s1005_s19 }
 0x1aa   : > { %s1283_s4 = spop %1282 }
 0x1ab   : > { %s873_s7 = sadd.f32 %s1283_s4, %s1226_s26  ;;  %s1285_s24 = spop %1284 }
 0x1ac   : > { %s877_s13 = sadd.f32 %s1285_s24, %s1227_s1  ;;  %s1287_s16 = spop %1286 }
 0x1ad   : > { %875 = sst [smem:[#allocation2 + $0x1]] %s873_s7 }
 0x1ae   : > { %s953_s29 = ssub.f32 0.0, %s873_s7  ;;  %s955_s21 = smul.f32 0.001953125, %s877_s13 }
 0x1af   : > { %879 = sst [smem:[#allocation2 + $0x2]] %s877_s13  ;;  %s1289_s12 = spop %1288 }
 0x1b0   : > { %s954_s28 = smul.f32 0.001953125, %s953_s29  ;;  %s1257_s9 = sadd.f32 -0.4, %s955_s21 }
 0x1b1   : > { %s2132_s27 = sadd.f32 %s1287_s16, %s1228_s30  ;;  %s575_s10 = smul.f32 0.00390625, %s1289_s12 }
 0x1b2   : > { %s957_s11 = smul.f32 %s1257_s9, %s1257_s9  ;;  %s2134_s19 = sadd.f32 %s1289_s12, %s1229_s15 }
 0x1b3   : > { %883 = sst [smem:[#allocation2 + $0x3]] %s2132_s27  ;;  %v576_v44 = vstv %s575_s10  ;;  %s1291_s30 = spop %1290 }
 0x1b4   : > { %s958_s26 = sadd.f32 %s957_s11, %s954_s28  ;;  %v577_v45 = vsub.f32 %v2035_v8, %v576_v44  ;;  %v578_v46 = vsub.f32 %v2037_v9, %v576_v44  ;;  %s960_s1 = smul.f32 0.001953125, %s2134_s19 }
 0x1b5   : > { %887 = sst [smem:[#allocation2 + $0x4]] %s2134_s19  ;;  %s607_s7 = smul.f32 0.00390625, %s1291_s30 }
 0x1b6   : > { %s1009_s4 = sadd.f32 %s1264_s20, %s958_s26  ;;  %v579_v47 = vmul.f32 %v577_v45, %v577_v45  ;;  %v580_v48 = vmul.f32 %v578_v46, %v578_v46  ;;  %s1680_s11 = smov 127   ;;  %v785_v45 = vand.u32 2147483647, %v783_v41  ;;  %v784_v46 = vsub.f32 %v2046_v15, %v780_v42 }
 0x1b7   : > { %s1258_s24 = sadd.f32 -0.5, %s960_s1  ;;  %v608_v51 = vstv %s607_s7  ;;  %s1232_s26 = sld [smem:[#allocation2 + $0x7]] }
 0x1b8   : > { %1353 = sst [smem:[#allocation14 + $0x1]] (%p1388_p10), %s1009_s4  ;;  %v581_v49 = vsel %vm474_vm0, %v579_v47, 0.0  ;;  %v582_v50 = vsel %vm474_vm0, %v580_v48, 0.0  ;;  %v609_v53 = vsub.f32 %v2039_v10, %v608_v51  ;;  %v610_v54 = vsub.f32 %v2046_v15, %v608_v51 }
 0x1b9   : > { %s963_s15 = sand.u32 2147483647, %s1258_s24  ;;  %v583_v52 = vadd.f32 %v582_v50, %v581_v49  ;;  %s889_s13 = sadd.f32 %s1291_s30, %s2130_s17  ;;  %v786_v49 = vand.u32 2147483647, %v784_v46  ;;  %v705_v50 = vrot.slane %v2035_v8, 7  ;;  %v706_v51 = vrot.slane %v2037_v9, 7 }
 0x1ba   : > { %v611_v55 = vmul.f32 %v609_v53, %v609_v53  ;;  %v612_v56 = vmul.f32 %v610_v54, %v610_v54  ;;  %s1259_s16 = sadd.f32 -0.2, %s963_s15  ;;  %v768_v53 = vrot.slane %v2039_v10, 7  ;;  %v769_v54 = vrot.slane %v2046_v15, 7  ;;  %s1265_s24 = sld [smem:[#allocation3 + $0x2]] }
 0x1bb   : > { %584 = vadd.xlane.f32.xlu0 %v583_v52  ;;  %891 = sst [smem:[#allocation2 + $0x5]] %s889_s13  ;;  %s961_s20 = smul.f32 0.001953125, %s889_s13  ;;  %v707_v52 = vsel %vm704_vm1, %v705_v50, %v706_v51 }
 0x1bc   : > { %v613_v57 = vsel %vm474_vm0, %v611_v55, 0.0  ;;  %v614_v58 = vsel %vm474_vm0, %v612_v56, 0.0  ;;  %s2153_s28 = smax.f32 %s1678_s14, %s1259_s16  ;;  %v710_v55 = vsub.f32 %v2035_v8, %v705_v50  ;;  %v711_v56 = vsub.f32 %v2037_v9, %v707_v52  ;;  %s959_s15 = smul.f32 0.001953125, %s2132_s27 }
 0x1bd   : > { %s1260_s29 = sadd.f32 -0.5, %s961_s20  ;;  %v615_v59 = vadd.f32 %v614_v58, %v613_v57  ;;  %v770_v57 = vsel %vm704_vm1, %v768_v53, %v769_v54  ;;  %v773_v60 = vsub.f32 %v2039_v10, %v768_v53  ;;  %v1222_v10 = vadd.f32 -0.75, %v2021_v0 }
 0x1be   : > { %s2150_s21 = ssub.f32 %s960_s1, %s961_s20  ;;  %v712_v58 = vand.u32 2147483647, %v710_v55  ;;  %v774_v61 = vsub.f32 %v2046_v15, %v770_v57  ;;  %v1223_v15 = vadd.f32 -0.75, %v2023_v1  ;;  %v1681_v52 = vmov 0.0  }
 0x1bf   : > { %s967_s12 = sand.u32 2147483647, %s1260_s29  ;;  %616 = vadd.xlane.f32.xlu1 %v615_v59  ;;  %v713_v59 = vand.u32 2147483647, %v711_v56  ;;  %v775_v6 = vand.u32 2147483647, %v773_v60  ;;  %v832_v24 = vmul.f32 %v1222_v10, %v1222_v10 }
 0x1c0   : > { %s1261_s17 = sadd.f32 -0.2, %s967_s12  ;;  %v727_v3 = vrot.slane %v712_v58, 1  ;;  %v776_v7 = vand.u32 2147483647, %v774_v61  ;;  %v833_v25 = vmul.f32 %v1223_v15, %v1223_v15  ;;  %v1224_v53 = vsel %vm848_vm7, 1.0, %v1681_v52 }
 0x1c1   : > { %v728_v4 = vrot.slane %v713_v59, 1  ;;  %v789_v17 = vrot.slane %v775_v6, 1  ;;  %v834_v30 = vmul.f32 %v832_v24, %v828_v22  ;;  %v1225_v54 = vsel %vm849_vm8, 1.0, %v1681_v52 }
 0x1c2   : > { %s2156_s9 = smax.f32 %s1678_s14, %s1261_s17  ;;  %v790_v18 = vrot.slane %v776_v7, 1  ;;  %v854_v56 = vmul.f32 %v1224_v53, %v2035_v8  ;;  %v855_v57 = vmul.f32 %v1225_v54, %v2037_v9  ;;  %s1270_s17 = sld [smem:[#allocation3 + $0x7]] }
 0x1c3   : > { %s970_s10 = sadd.f32 %s2156_s9, %s2153_s28  ;;  %661 = vadd.xlane.f32.xlu1 %v660_v31  ;;  %v729_v16 = vsel %vm726_vm2, %v727_v3, %v728_v4  ;;  %v734_v21 = vsel %vm733_vm3, %v728_v4, 0.0  ;;  %v835_v31 = vmul.f32 %v833_v25, %v829_v23  ;;  %v836_v33 = vsel %vm474_vm0, %v834_v30, 0.0 }
 0x1c4   : > { %v732_v20 = vsel %vm474_vm0, %v729_v16, 0.0  ;;  %v791_v26 = vsel %vm726_vm2, %v789_v17, %v790_v18  ;;  %v795_v29 = vsel %vm733_vm3, %v790_v18, 0.0  ;;  %v856_v59 = vsel %vm474_vm0, %v854_v56, 0.0 }
 0x1c5   : > { %v735_v27 = vadd.f32 %v734_v21, %v732_v20  ;;  %v794_v28 = vsel %vm474_vm0, %v791_v26, 0.0  ;;  %v857_v60 = vsel %vm474_vm0, %v855_v57, 0.0  ;;  %s976_s20 = sadd.f32 %s970_s10, %s959_s15 }
 0x1c6   : > { %v858_v8 = vadd.f32 %v857_v60, %v856_v59 }
 0x1c7   : > { %677 = vadd.xlane.f32.xlu1 %v676_v32  ;;  %v796_v32 = vadd.f32 %v795_v29, %v794_v28 }
 0x1c8   : > { %1359 = sst [smem:[#allocation14 + $0x7]] (%p1388_p10), %s1270_s17 }
 0x1cb   : > { %693 = vadd.xlane.f32.xlu1 %v692_v12 }
 0x1d1   : > { %716 = vrot.lane.b32.xlu0 %v2037_v9, %s1679_s23 }
 0x1d5   : > { %747 = vrot.lane.b32.xlu0 %v722_v62, %s1680_s11  ;;  %v636_v62 = vmul.f32 %v2025_v2, %v2021_v0  ;;  %v837_v2 = vsel %vm474_vm0, %v835_v31, 0.0 }
 0x1d6   : > { %v838_v5 = vadd.f32 %v837_v2, %v836_v33 }
 0x1d7   : > { %v638_v11 = vsel %vm474_vm0, %v636_v62, 0.0 }
 0x1d8   : > { %v640_v19 = vadd.f32 %v639_v14, %v638_v11 }
 0x248   : > { %v585_v13 = vpop.xlane.xlu0 %584 }
 0x249   : > { %v586_v36 = vrot.slane %v585_v13, 4 }
 0x24b   : > { %v587_v37 = vadd.f32 %v586_v36, %v585_v13 }
 0x24c   : > { %v717_v38 = vpop.permute.xlu0 %716  ;;  %v617_v34 = vpop.xlane.xlu1 %616 }
 0x24d   : > { %v588_v39 = vrot.slane %v587_v37, 2  ;;  %v721_v40 = vsub.f32 %v2037_v9, %v717_v38  ;;  %v618_v12 = vrot.slane %v617_v34, 4 }
 0x24f   : > { %v723_v43 = vand.u32 2147483647, %v721_v40  ;;  %v589_v44 = vadd.f32 %v588_v39, %v587_v37  ;;  %v619_v36 = vadd.f32 %v618_v12, %v617_v34 }
 0x250   : > { %v662_v14 = vpop.xlane.xlu1 %661 }
 0x251   : > { %749 = vrot.lane.b32.xlu0 %v723_v43, %s1680_s11  ;;  %v590_v47 = vrot.slane %v589_v44, 1  ;;  %v620_v38 = vrot.slane %v619_v36, 2  ;;  %v663_v15 = vrot.slane %v662_v14, 4 }
 0x253   : > { %v591_v48 = vadd.f32 %v590_v47, %v589_v44  ;;  %v621_v39 = vadd.f32 %v620_v38, %v619_v36  ;;  %v748_v47 = vpop.permute.xlu0 %747 }
 0x254   : > { %v678_v16 = vpop.xlane.xlu1 %677 }
 0x255   : > { %1292 = vpush %v591_v48  ;;  %808 = vrot.lane.b32.xlu0 %v785_v45, %s1680_s11  ;;  %v622_v40 = vrot.slane %v621_v39, 1  ;;  %v679_v17 = vrot.slane %v678_v16, 4 }
 0x257   : > { %v623_v44 = vadd.f32 %v622_v40, %v621_v39  ;;  %v680_v20 = vadd.f32 %v679_v17, %v678_v16 }
 0x258   : > { %v694_v10 = vpop.xlane.xlu1 %693 }
 0x259   : > { %810 = vrot.lane.b32.xlu0 %v786_v49, %s1680_s11  ;;  %v754_v49 = vsel %vm753_vm6, %v748_v47, 0.0  ;;  %v695_v18 = vrot.slane %v694_v10, 4  ;;  %v681_v23 = vrot.slane %v680_v20, 2  ;;  %s1233_s11 = sld [smem:[#allocation2 + $0x8]] }
 0x25b   : > { %v696_v21 = vadd.f32 %v695_v18, %v694_v10  ;;  %v682_v29 = vadd.f32 %v681_v23, %v680_v20 }
 0x25d   : > { %v697_v25 = vrot.slane %v696_v21, 2  ;;  %v683_v12 = vrot.slane %v682_v29, 1 }
 0x25f   : > { %v698_v31 = vadd.f32 %v697_v25, %v696_v21  ;;  %v684_v39 = vadd.f32 %v683_v12, %v682_v29 }
 0x278   : > { %641 = vadd.xlane.f32.xlu0 %v640_v19  ;;  %v664_v19 = vadd.f32 %v663_v15, %v662_v14 }
 0x27a   : > { %v665_v22 = vrot.slane %v664_v19, 2 }
 0x27c   : > { %736 = vadd.xlane.f32.xlu0 %v735_v27  ;;  %v666_v27 = vadd.f32 %v665_v22, %v664_v19 }
 0x27e   : > { %v667_v2 = vrot.slane %v666_v27, 1 }
 0x280   : > { %797 = vadd.xlane.f32.xlu0 %v796_v32 }
 0x284   : > { %839 = vadd.xlane.f32.xlu0 %v838_v5 }
 0x286   : > { %s1293_s8 = spop %1292 }
 0x287   : > { %v593_v13 = vstv %s1293_s8  ;;  %s1234_s8 = sld [smem:[#allocation2 + $0x9]] }
 0x288   : > { %v595_v35 = vmul.f32 0.003921569, %v593_v13  ;;  %v699_v13 = vrot.slane %v698_v31, 1 }
 0x28a   : > { %v596_v37 = vmax.f32 %v595_v35, 0.0 }
 0x28c   : > { %1439 = vrsqrt.f32 %v596_v37  ;;  %vm599_vm4 = vcmp.eq.f32.partialorder %v596_v37, inf  ;;  %v602_v43 = vand.u32 2147483648, %v596_v37  ;;  %vm601_vm5 = vcmp.eq.f32.partialorder %v596_v37, 0.0 }
 0x296   : > { %v1440_v41 = vpop.eup %1439 }
 0x297   : > { %v598_v42 = vmul.f32 %v1440_v41, %v596_v37  ;;  %v700_v41 = vadd.f32 %v699_v13, %v698_v31 }
 0x299   : > { %v600_v45 = vsel %vm599_vm4, %v596_v37, %v598_v42  ;;  %v668_v37 = vadd.f32 %v667_v2, %v666_v27 }
 0x29a   : > { %v603_v46 = vsel %vm601_vm5, %v602_v43, %v600_v45 }
 0x29b   : > { %1294 = vpush %v603_v46 }
 0x29c   : > { %1296 = vpush %v623_v44 }
 0x2c3   : > { %v750_v48 = vpop.permute.xlu0 %749 }
 0x2c4   : > { %v755_v50 = vsel %vm753_vm6, %v750_v48, 0.0 }
 0x2c5   : > { %v756_v51 = vadd.f32 %v755_v50, %v754_v49 }
 0x2c7   : > { %v809_v55 = vpop.permute.xlu0 %808  ;;  %757 = vadd.xlane.f32.xlu1 %v756_v51 }
 0x2c8   : > { %v814_v0 = vsel %vm753_vm6, %v809_v55, 0.0 }
 0x2cb   : > { %v811_v58 = vpop.permute.xlu0 %810 }
 0x2cc   : > { %v815_v1 = vsel %vm753_vm6, %v811_v58, 0.0  ;;  %s1295_s14 = spop %1294 }
 0x2cd   : > { %s2230_s23 = sadd.f32 %s1295_s14, %s1231_s2  ;;  %v816_v61 = vadd.f32 %v815_v1, %v814_v0  ;;  %s1297_s19 = spop %1296 }
 0x2ce   : > { %v625_v62 = vstv %s1297_s19  ;;  %s1235_s2 = sld [smem:[#allocation2 + $0xa]]  ;;  %s1236_s14 = sld [smem:[#allocation2 + $0xb]] }
 0x2cf   : > { %895 = sst [smem:[#allocation2 + $0x6]] %s2230_s23  ;;  %817 = vadd.xlane.f32.xlu1 %v816_v61  ;;  %v626_v9 = vmul.f32 0.003921569, %v625_v62 }
 0x2d0   : > { %s1266_s19 = sld [smem:[#allocation3 + $0x3]] }
 0x2d1   : > { %v627_v63 = vmax.f32 %v626_v9, 0.0 }
 0x2d3   : > { %859 = vadd.xlane.f32.xlu1 %v858_v8  ;;  %1441 = vrsqrt.f32 %v627_v63  ;;  %vm630_vm9 = vcmp.eq.f32.partialorder %v627_v63, inf  ;;  %v633_v4 = vand.u32 2147483648, %v627_v63  ;;  %vm632_vm10 = vcmp.eq.f32.partialorder %v627_v63, 0.0 }
 0x2dd   : > { %v1442_v3 = vpop.eup %1441 }
 0x2de   : > { %v629_v6 = vmul.f32 %v1442_v3, %v627_v63 }
 0x2e0   : > { %v631_v7 = vsel %vm630_vm9, %v627_v63, %v629_v6 }
 0x2e1   : > { %v634_v11 = vsel %vm632_vm10, %v633_v4, %v631_v7 }
 0x2e2   : > { %1298 = vpush %v634_v11 }
 0x305   : > { %v642_v24 = vpop.xlane.xlu0 %641 }
 0x306   : > { %v643_v26 = vrot.slane %v642_v24, 4 }
 0x308   : > { %v644_v28 = vadd.f32 %v643_v26, %v642_v24 }
 0x309   : > { %v737_v30 = vpop.xlane.xlu0 %736 }
 0x30a   : > { %v645_v32 = vrot.slane %v644_v28, 2  ;;  %v738_v33 = vrot.slane %v737_v30, 4 }
 0x30c   : > { %v739_v5 = vadd.f32 %v738_v33, %v737_v30  ;;  %v646_v34 = vadd.f32 %v645_v32, %v644_v28 }
 0x30d   : > { %v798_v44 = vpop.xlane.xlu0 %797 }
 0x30e   : > { %v740_v35 = vrot.slane %v739_v5, 2  ;;  %v647_v36 = vrot.slane %v646_v34, 1  ;;  %v799_v45 = vrot.slane %v798_v44, 4 }
 0x310   : > { %v648_v38 = vadd.f32 %v647_v36, %v646_v34  ;;  %v741_v40 = vadd.f32 %v740_v35, %v739_v5  ;;  %v800_v46 = vadd.f32 %v799_v45, %v798_v44 }
 0x311   : > { %v840_v47 = vpop.xlane.xlu0 %839 }
 0x312   : > { %1300 = vpush %v648_v38  ;;  %v742_v42 = vrot.slane %v741_v40, 1  ;;  %v801_v48 = vrot.slane %v800_v46, 2  ;;  %v841_v50 = vrot.slane %v840_v47, 4 }
 0x313   : > { %1302 = vpush %v668_v37  ;;  %s1299_s1 = spop %1298 }
 0x314   : > { %1304 = vpush %v684_v39  ;;  %v743_v43 = vadd.f32 %v742_v42, %v741_v40  ;;  %s897_s30 = sadd.f32 %s1299_s1, %s1232_s26  ;;  %v802_v52 = vadd.f32 %v801_v48, %v800_v46  ;;  %v842_v54 = vadd.f32 %v841_v50, %v840_v47 }
 0x315   : > { %1306 = vpush %v700_v41 }
 0x316   : > { %1308 = vpush %v743_v43  ;;  %899 = sst [smem:[#allocation2 + $0x7]] %s897_s30  ;;  %v803_v56 = vrot.slane %v802_v52, 1  ;;  %v843_v58 = vrot.slane %v842_v54, 2 }
 0x317   : > { %s971_s4 = sadd.f32 %s897_s30, %s2230_s23 }
 0x318   : > { %v804_v60 = vadd.f32 %v803_v56, %v802_v52  ;;  %v844_v8 = vadd.f32 %v843_v58, %v842_v54 }
 0x319   : > { %s972_s7 = ssub.f32 0.0, %s971_s4 }
 0x31a   : > { %v845_v7 = vrot.slane %v844_v8, 1 }
 0x31b   : > { %s975_s13 = smul.f32 0.5, %s972_s7 }
 0x31c   : > { %v846_v15 = vadd.f32 %v845_v7, %v844_v8 }
 0x31d   : > { %s977_s16 = smul.f32 0.5, %s975_s13 }
 0x31f   : > { %s978_s29 = sadd.f32 %s977_s16, %s976_s20  ;;  %s1267_s16 = sld [smem:[#allocation3 + $0x4]] }
 0x321   : > { %s1013_s12 = sadd.f32 %s1265_s24, %s978_s29 }
 0x323   : > { %1354 = sst [smem:[#allocation14 + $0x2]] (%p1388_p10), %s1013_s12 }
 0x343   : > { %s1301_s23 = spop %1300 }
 0x344   : > { %s901_s26 = sadd.f32 %s1301_s23, %s1233_s11  ;;  %s1303_s1 = spop %1302 }
 0x345   : > { %s905_s30 = sadd.f32 %s1303_s1, %s1234_s8  ;;  %s1305_s4 = spop %1304 }
 0x346   : > { %903 = sst [smem:[#allocation2 + $0x8]] %s901_s26  ;;  %s979_s28 = smul.f32 0.001953125, %s901_s26 }
 0x347   : > { %907 = sst [smem:[#allocation2 + $0x9]] %s905_s30  ;;  %s982_s9 = smul.f32 0.001953125, %s905_s30 }
 0x348   : > { %s1262_s10 = sadd.f32 -0.7, %s979_s28  ;;  %s1307_s7 = spop %1306 }
 0x349   : > { %s909_s24 = sadd.f32 %s1305_s4, %s1235_s2  ;;  %s1237_s2 = sld [smem:[#allocation2 + $0xc]] }
 0x34a   : > { %s981_s13 = smul.f32 %s1262_s10, %s1262_s10  ;;  %s913_s20 = sadd.f32 %s1307_s7, %s1236_s14 }
 0x34b   : > { %911 = sst [smem:[#allocation2 + $0xa]] %s909_s24  ;;  %s1309_s14 = spop %1308 }
 0x34c   : > { %s983_s29 = sadd.f32 %s982_s9, %s981_s13  ;;  %s1239_s1 = sld [smem:[#allocation2 + $0xe]] }
 0x34d   : > { %915 = sst [smem:[#allocation2 + $0xb]] %s913_s20  ;;  %s1238_s30 = sld [smem:[#allocation2 + $0xd]] }
 0x34e   : > { %s1017_s12 = sadd.f32 %s1266_s19, %s983_s29  ;;  %s1240_s9 = sld [smem:[#allocation2 + $0xf]] }
 0x34f   : > { %s984_s17 = sadd.f32 %s913_s20, %s909_s24 }
 0x350   : > { %1355 = sst [smem:[#allocation14 + $0x3]] (%p1388_p10), %s1017_s12 }
 0x351   : > { %s985_s11 = smul.f32 0.001953125, %s984_s17  ;;  %s1268_s17 = sld [smem:[#allocation3 + $0x5]] }
 0x353   : > { %s1021_s8 = sadd.f32 %s1267_s16, %s985_s11  ;;  %s996_s11 = sand.u32 2147483647, %s2150_s21 }
 0x354   : > { %v758_v49 = vpop.xlane.xlu1 %757 }
 0x355   : > { %v759_v51 = vrot.slane %v758_v49, 4  ;;  %1356 = sst [smem:[#allocation14 + $0x4]] (%p1388_p10), %s1021_s8 }
 0x357   : > { %v760_v53 = vadd.f32 %v759_v51, %v758_v49 }
 0x359   : > { %v761_v55 = vrot.slane %v760_v53, 2 }
 0x35b   : > { %v762_v57 = vadd.f32 %v761_v55, %v760_v53 }
 0x35c   : > { %v818_v0 = vpop.xlane.xlu1 %817 }
 0x35d   : > { %v819_v1 = vrot.slane %v818_v0, 4  ;;  %v763_v59 = vrot.slane %v762_v57, 1 }
 0x35f   : > { %v820_v61 = vadd.f32 %v819_v1, %v818_v0  ;;  %v764_v62 = vadd.f32 %v763_v59, %v762_v57 }
 0x360   : > { %v860_v9 = vpop.xlane.xlu1 %859 }
 0x361   : > { %v821_v63 = vrot.slane %v820_v61, 2  ;;  %v861_v3 = vrot.slane %v860_v9, 4  ;;  %1310 = vpush %v764_v62 }
 0x362   : > { %1312 = vpush %v804_v60 }
 0x363   : > { %v862_v4 = vadd.f32 %v861_v3, %v860_v9  ;;  %v822_v6 = vadd.f32 %v821_v63, %v820_v61 }
 0x365   : > { %v863_v11 = vrot.slane %v862_v4, 2  ;;  %v823_v14 = vrot.slane %v822_v6, 1 }
 0x367   : > { %v864_v16 = vadd.f32 %v863_v11, %v862_v4  ;;  %v824_v10 = vadd.f32 %v823_v14, %v822_v6 }
 0x369   : > { %1314 = vpush %v824_v10  ;;  %v865_v17 = vrot.slane %v864_v16, 1 }
 0x36a   : > { %1316 = vpush %v846_v15 }
 0x36b   : > { %v866_v18 = vadd.f32 %v865_v17, %v864_v16 }
 0x36d   : > { %1318 = vpush %v866_v18 }
 0x392   : > { %s1311_s23 = spop %1310 }
 0x393   : > { %s1313_s19 = spop %1312 }
 0x394   : > { %s826_s26 = sadd.f32 %s1313_s19, %s1309_s14  ;;  %s1269_s14 = sld [smem:[#allocation3 + $0x6]] }
 0x395   : > { %s997_s19 = smul.f32 0.3, %s996_s11 }
 0x396   : > { %s917_s4 = sadd.f32 %s1237_s2, %s826_s26 }
 0x398   : > { %919 = sst [smem:[#allocation2 + $0xc]] %s917_s4  ;;  %s988_s20 = smul.f32 0.0020833334, %s917_s4 }
 0x39a   : > { %s1315_s28 = spop %1314 }
 0x39b   : > { %s827_s10 = sadd.f32 %s1315_s28, %s1311_s23  ;;  %s1317_s7 = spop %1316 }
 0x39c   : > { %s925_s24 = sadd.f32 %s1317_s7, %s1239_s1 }
 0x39d   : > { %s921_s13 = sadd.f32 %s1238_s30, %s827_s10 }
 0x39e   : > { %927 = sst [smem:[#allocation2 + $0xe]] %s925_s24  ;;  %s1319_s29 = spop %1318 }
 0x39f   : > { %923 = sst [smem:[#allocation2 + $0xd]] %s921_s13  ;;  %s991_s16 = smul.f32 0.0020833334, %s921_s13 }
 0x3a0   : > { %s929_s8 = sadd.f32 %s1319_s29, %s1240_s9  ;;  %s999_s4 = smul.f32 0.001953125, %s925_s24 }
 0x3a1   : > { %s992_s12 = sadd.f32 %s991_s16, %s988_s20  ;;  %s1606_s20 = scalar_lea.hbm %s2294_s6, 16 }
 0x3a2   : > { %931 = sst [smem:[#allocation2 + $0xf]] %s929_s8  ;;  %s1000_s23 = smul.f32 0.001953125, %s929_s8 }
 0x3a3   : > { %s993_s2 = smul.f32 0.2, %s992_s12  ;;  %p1607_p9 = scmp.ne.s32.totalorder %s2294_s6, %s1606_s20 }
 0x3a4   : > { %s1263_s1 = sadd.f32 -0.5, %s1000_s23  ;;  %p1612_p12 = scmp.lt.u32.totalorder %s1606_s20, %s2294_s6 }
 0x3a5   : > { %s994_s26 = sadd.f32 %s993_s2, %s959_s15  ;;  %p1608_p1 = pnand %p1607_p9, %p1388_p10 }
 0x3a6   : > { %s1002_s28 = smul.f32 %s1263_s1, %s1263_s1 }
 0x3a7   : > { %s998_s30 = sadd.f32 %s997_s19, %s994_s26  ;;  %p1609_p13 = pneg %p1608_p1 }
 0x3a8   : > { %s1003_s7 = sadd.f32 %s1002_s28, %s999_s4 }
 0x3a9   : > { %s1025_s10 = sadd.f32 %s1268_s17, %s998_s30  ;;  %p1614_p2 = pnand %p1612_p12, %p1609_p13 }
 0x3aa   : > { %s1029_s13 = sadd.f32 %s1269_s14, %s1003_s7 }
 0x3ab   : > { %1357 = sst [smem:[#allocation14 + $0x5]] (%p1388_p10), %s1025_s10 }
 0x3ac   : > { %1358 = sst [smem:[#allocation14 + $0x6]] (%p1388_p10), %s1029_s13 }
 0x3ad   : > { %1617 = shalt.err (!%p1614_p2)
}
 0x3ae   : > { %s1682_s24 = smov [#allocation14]  }
 0x3af   : > { %1361 = dma.smem_to_hbm (%p1388_p10), %s1682_s24, 16, %s2294_s6, [#allocation6]  }
 0x3b0   : > { %1651 = dma.done.wait (%p1388_p10), [#allocation6], 16  }
 0x3b1   : > { %1653 = vsyncadd (%p1388_p10), [#allocation6], 4294967280 }
 0x3b2   : > { %1048 = sfence }
 0x3b3 PF: > { %s2341_s11 = sld [smem:[#allocation20_spill]]  ;;  %s2342_s23 = sld [smem:[#allocation21_spill]] }
 0x3b4   : > { %p24_p8 = scmp.ge.s32.totalorder %s1739_s25, 4   ;;  %s2343_s21 = smov %s1660_s22 }
 0x3b5   : > { %s2345_s24 = smov %s1739_s25 }
 0x3b6   :  { %26 = sbr.rel (!%p24_p8) target bundleno = 13 (0xd), region = 182 }
 0x3b9   : > { %s2344_s22 = smov %s2341_s11 }
 0x3bd   :  { %1054 = vsyncpa [#allocation4], 1 }
 0x3be   :  { %1056 = vsyncpa [#allocation4 + $0x1], 1 }
 0x3bf   :  { %1057 = vsyncpa [#allocation9], 1 }
 0x3c0   :  { %1059 = vsyncpa [#allocation9 + $0x1], 1 }
 0x3c1   :  { %1060 = vsyncpa [#allocation12], 1 }
 0x3c2   :  { %1062 = vsyncpa [#allocation12 + $0x1], 1 }
 0x3c3   :  { %1063 = vsyncpa [#allocation5], 1 }
 0x3c4   :  { %1065 = vsyncpa [#allocation5 + $0x1], 1 }
 0x3c5   :  { %1066 = vsyncpa [#allocation6], 1 }
 0x3c6   :  { %1068 = vsyncpa [#allocation6 + $0x1], 1 }

</bundles_post_ra>
